<compile_context>
chip_gen: v6e
topology: v6e:2x2x1
jax: 0.10.0
libtpu: 0.0.40
codegen_flags: <defaults>
</compile_context>

<pallas_src>
import functools
import math

import jax
import jax.numpy as jnp
from jax.experimental import pallas as pl
from jax.experimental.pallas import tpu as pltpu


def _vmem_limit_bytes():
    """~75% of physical VMEM: ~96 MiB on v5e/v6e (128 MiB), ~48 MiB on v7x (64 MiB)."""
    try:
        cap = pltpu.get_tpu_info().vmem_capacity_bytes
    except Exception:
        cap = 64 * 1024 * 1024
    return int(min(cap * 3 // 4, 100 * 1024 * 1024))


def _gelu(x):
    # tanh-approximate GELU (BERT style); PyTorch nn.GELU default is erf-based,
    # numerics differ at the ~1e-3 level.
    return 0.5 * x * (1.0 + jnp.tanh(0.7978845608028654 * (x + 0.044715 * x * x * x)))


def _layer_norm(x, gamma, beta, eps=1e-12):
    mean = jnp.mean(x, axis=-1, keepdims=True)
    xc = x - mean
    var = jnp.mean(xc * xc, axis=-1, keepdims=True)
    return xc * jax.lax.rsqrt(var + eps) * gamma + beta


# ----------------------------- fused kernel -----------------------------

def _fused_bert_kernel(valid_ref,
                       emb_ref,
                       g_emb_ref, b_emb_ref,
                       wqkv_ref, bqkv_ref,
                       wo_ref, bo_ref, g_attn_ref, b_attn_ref,
                       w1_ref, b1_ref, w2_ref, b2_ref, g_ffn_ref, b_ffn_ref,
                       wp_ref, bp_ref, wc_ref, bc_ref,
                       out_ref,
                       *, num_heads, head_dim, hidden, seq_len):
    """Entire encoder-layer + pooler + classifier for one batch item.

    Everything after the embedding gather stays in VMEM/vregs; the only HBM
    store is the lane-dense (1, 128) padded logits row.
    """
    b = pl.program_id(0)
    valid = valid_ref[b]                                   # scalar from SMEM

    # ---- embedding LayerNorm ----
    x = emb_ref[...].astype(jnp.float32)                   # (S, H)
    h0_f32 = _layer_norm(x, g_emb_ref[...], b_emb_ref[...])
    h0 = h0_f32.astype(jnp.bfloat16)

    # ---- fused QKV projection (softmax scale pre-folded into Q weights) ----
    qkv = (jnp.dot(h0, wqkv_ref[...], preferred_element_type=jnp.float32)
           + bqkv_ref[...]).astype(jnp.bfloat16)           # (S, 3H)

    # ---- self-attention; key mask built from scalar-prefetched valid_length ----
    # NOTE: valid_length == 0 would mask every key (-1e9) -> uniform softmax
    # over padding, matching the HF-style additive-mask behavior.
    key_valid = jax.lax.broadcasted_iota(jnp.int32, (1, seq_len), 1) < valid
    # num_heads == 2 here so the head loop is a tiny full unroll.
    # TODO(synk): batched-head, lane-aligned score matmul for large head counts.
    ctx_heads = []
    for h in range(num_heads):
        lo = h * head_dim
        q = qkv[:, lo:lo + head_dim]
        k = qkv[:, hidden + lo:hidden + lo + head_dim]
        v = qkv[:, 2 * hidden + lo:2 * hidden + lo + head_dim]
        s = jnp.einsum("qd,kd->qk", q, k,
                       preferred_element_type=jnp.float32)           # (S, S) f32
        s = jnp.where(key_valid, s, jnp.float32(-1e9))
        m = jnp.max(s, axis=-1, keepdims=True)
        p = jnp.exp(s - m)
        denom = jnp.sum(p, axis=-1, keepdims=True)
        p = p * pl.reciprocal(denom, approx=True)
        ctx_heads.append(jnp.dot(p.astype(jnp.bfloat16), v,
                                 preferred_element_type=jnp.float32))  # (S, Dh)
    ctx = jnp.concatenate(ctx_heads, axis=-1).astype(jnp.bfloat16)     # (S, H)

    # ---- attention output projection + residual + LayerNorm (fused) ----
    ao = (jnp.dot(ctx, wo_ref[...], preferred_element_type=jnp.float32)
          + bo_ref[...])
    h1_f32 = _layer_norm(ao + h0_f32, g_attn_ref[...], b_attn_ref[...])
    h1 = h1_f32.astype(jnp.bfloat16)

    # ---- FFN (gelu) + residual + LayerNorm (fused) ----
    ff = (jnp.dot(h1, w1_ref[...], preferred_element_type=jnp.float32)
          + b1_ref[...])
    ff = _gelu(ff).astype(jnp.bfloat16)
    f2 = (jnp.dot(ff, w2_ref[...], preferred_element_type=jnp.float32)
          + b2_ref[...])
    h2_f32 = _layer_norm(f2 + h1_f32, g_ffn_ref[...], b_ffn_ref[...])
    h2 = h2_f32.astype(jnp.bfloat16)

    # ---- pooler (tanh) + classifier, lane-dense padded logits ----
    # Pooler/classifier run on all S rows (free at sublane granularity); only
    # the CLS row is stored.
    # TODO(synk): dropout path (dr_rate != None) not implemented; module default is None.
    pooled = jnp.tanh(jnp.dot(h2, wp_ref[...],
                              preferred_element_type=jnp.float32) + bp_ref[...])
    logits = (jnp.dot(pooled.astype(jnp.bfloat16), wc_ref[...],
                      preferred_element_type=jnp.float32) + bc_ref[...])   # (S, Cpad)
    out_ref[...] = logits[0:1, :]


# ----------------------------- wrapper -----------------------------

def fused_bert_classifier(valid_length, emb, params, *, num_heads, hidden, seq_len):
    B = emb.shape[0]
    head_dim = hidden // num_heads
    ffn = params["w1"].shape[1]
    cpad = params["cls_w_pad"].shape[1]

    tensor_args = (
        emb,
        params["ln_emb"][0], params["ln_emb"][1],
        params["w_qkv"], params["b_qkv"],
        params["wo"], params["bo"], params["ln_attn"][0], params["ln_attn"][1],
        params["w1"], params["b1"], params["w2"], params["b2"],
        params["ln_ffn"][0], params["ln_ffn"][1],
        params["pooler_w"], params["pooler_b"],
        params["cls_w_pad"], params["cls_b_pad"],
    )

    def resident(arr):
        # weights / biases / LN params: single block, same index every step
        # -> stays resident in VMEM across the (parallel) batch grid.
        return pl.BlockSpec(arr.shape, lambda b, vl: (0, 0))

    in_specs = ([pl.BlockSpec((None, seq_len, hidden), lambda b, vl: (b, 0, 0))]
                + [resident(a) for a in tensor_args[1:]])

    flops = int(B * (2 * seq_len * hidden * 3 * hidden
                     + num_heads * 4 * seq_len * seq_len * head_dim
                     + 2 * seq_len * hidden * hidden
                     + 2 * seq_len * hidden * ffn
                     + 2 * seq_len * ffn * hidden
                     + 2 * seq_len * hidden * hidden
                     + 2 * seq_len * hidden * cpad))
    transcendentals = int(B * (num_heads * seq_len * seq_len      # exp
                               + seq_len * ffn                    # gelu tanh
                               + seq_len * hidden                 # pooler tanh
                               + 4 * seq_len))                    # LN rsqrt
    bytes_accessed = int(sum(a.size * a.dtype.itemsize for a in tensor_args)
                         + B * cpad * 4)

    kernel = functools.partial(_fused_bert_kernel, num_heads=num_heads,
                               head_dim=head_dim, hidden=hidden, seq_len=seq_len)

    out = pl.pallas_call(
        kernel,
        out_shape=jax.ShapeDtypeStruct((B, 1, cpad), jnp.float32),
        grid_spec=pltpu.PrefetchScalarGridSpec(
            num_scalar_prefetch=1,
            grid=(B,),
            in_specs=in_specs,
            out_specs=pl.BlockSpec((None, 1, cpad), lambda b, vl: (b, 0, 0))),
        compiler_params=pltpu.CompilerParams(
            dimension_semantics=("parallel",),
            vmem_limit_bytes=_vmem_limit_bytes()),
        cost_estimate=pl.CostEstimate(flops=flops,
                                      transcendentals=transcendentals,
                                      bytes_accessed=bytes_accessed),
    )(valid_length.astype(jnp.int32), *tensor_args)
    return out.reshape(B, cpad)


# ----------------------------- parameters -----------------------------

def _dense_params(key, fan_in, fan_out):
    kw, kb = jax.random.split(key)
    w = jax.random.normal(kw, (fan_in, fan_out), jnp.float32) * 0.02
    b = jax.random.normal(kb, (1, fan_out), jnp.float32) * 0.02
    return w, b


def init_params(key, vocab, type_vocab, max_pos, hidden, ffn, num_classes, num_heads):
    head_dim = hidden // num_heads
    scale = 1.0 / math.sqrt(head_dim)
    keys = jax.random.split(key, 12)
    p = {}
    # embedding tables stored in bf16 (halves gather bandwidth; LN stats are f32 anyway)
    p["word_emb"] = (jax.random.normal(keys[0], (vocab, hidden), jnp.float32) * 0.02
                     ).astype(jnp.bfloat16)
    p["pos_emb"] = (jax.random.normal(keys[1], (max_pos, hidden), jnp.float32) * 0.02
                    ).astype(jnp.bfloat16)
    p["type_emb"] = (jax.random.normal(keys[2], (type_vocab, hidden), jnp.float32) * 0.02
                     ).astype(jnp.bfloat16)
    ones = jnp.ones((1, hidden), jnp.float32)
    zeros = jnp.zeros((1, hidden), jnp.float32)
    p["ln_emb"] = (ones, zeros)
    p["ln_attn"] = (ones, zeros)
    p["ln_ffn"] = (ones, zeros)

    wq, bq = _dense_params(keys[3], hidden, hidden)
    wk, bk = _dense_params(keys[4], hidden, hidden)
    wv, bv = _dense_params(keys[5], hidden, hidden)
    # fold softmax 1/sqrt(head_dim) into the Q projection (weights AND bias)
    wq = wq * scale
    bq = bq * scale
    p["w_qkv"] = jnp.concatenate([wq, wk, wv], axis=1).astype(jnp.bfloat16)  # (H, 3H)
    p["b_qkv"] = jnp.concatenate([bq, bk, bv], axis=1)                        # (1, 3H) f32

    wo, bo = _dense_params(keys[6], hidden, hidden)
    p["wo"], p["bo"] = wo.astype(jnp.bfloat16), bo
    w1, b1 = _dense_params(keys[7], hidden, ffn)
    w2, b2 = _dense_params(keys[8], ffn, hidden)
    p["w1"], p["b1"] = w1.astype(jnp.bfloat16), b1
    p["w2"], p["b2"] = w2.astype(jnp.bfloat16), b2
    wp, bp = _dense_params(keys[9], hidden, hidden)
    p["pooler_w"], p["pooler_b"] = wp.astype(jnp.bfloat16), bp

    wc, bc = _dense_params(keys[10], hidden, num_classes)
    cpad = ((num_classes + 127) // 128) * 128
    # classifier weight bf16 (f32 accumulate in-kernel), lane-dense padded to 128
    p["cls_w_pad"] = (jnp.zeros((hidden, cpad), jnp.float32)
                      .at[:, :num_classes].set(wc)).astype(jnp.bfloat16)
    p["cls_b_pad"] = jnp.zeros((1, cpad), jnp.float32).at[:, :num_classes].set(bc)
    return p


# ----------------------------- forward pass -----------------------------

def bert_classifier_forward(params, token_ids, valid_length, segment_ids,
                            num_heads, num_classes, dr_rate=None):
    B, S = token_ids.shape
    H = params["word_emb"].shape[1]

    # embedding gathers stay in glue JAX (XLA gather); everything after is one kernel.
    # TODO(synk): fuse the gather via scalar-prefetched token ids + pl.Element row maps.
    emb = (jnp.take(params["word_emb"], token_ids, axis=0).astype(jnp.float32)
           + params["pos_emb"][None, :S, :].astype(jnp.float32)
           + jnp.take(params["type_emb"], segment_ids.astype(jnp.int32),
                      axis=0).astype(jnp.float32)).astype(jnp.bfloat16)

    logits_pad = fused_bert_classifier(valid_length, emb, params,
                                       num_heads=num_heads, hidden=H, seq_len=S)
    # dr_rate is None in this config -> dropout is identity
    return logits_pad[:, :num_classes]


# ----------------------------- main -----------------------------

if __name__ == "__main__":
    B, S = 2, 8
    H, NUM_HEADS, FFN = 32, 2, 64
    NUM_CLASSES = 2
    VOCAB, TYPE_VOCAB, MAX_POS = 100, 2, 16

    key = jax.random.PRNGKey(0)
    k_tok, k_seg, k_par = jax.random.split(key, 3)

    token_ids = jax.random.randint(k_tok, (B, S), 0, VOCAB, dtype=jnp.int32)
    segment_ids = jax.random.randint(k_seg, (B, S), 0, TYPE_VOCAB, dtype=jnp.int32)
    valid_length = jnp.array([5, 8], dtype=jnp.int32)

    params = init_params(k_par, VOCAB, TYPE_VOCAB, MAX_POS, H, FFN, NUM_CLASSES,
                         NUM_HEADS)

    logits = bert_classifier_forward(params, token_ids, valid_length, segment_ids,
                                     num_heads=NUM_HEADS, num_classes=NUM_CLASSES,
                                     dr_rate=None)
    jax.block_until_ready(logits)
    assert logits.shape == (B, NUM_CLASSES)
    assert bool(jnp.all(jnp.isfinite(logits)))
    print("KERNEL_OK")
</pallas_src>

<mosaic_0001>
module attributes {stable_mosaic.version = 11 : i64} {
  func.func @_fused_bert_kernel(%arg0: i32, %arg1: memref<2xi32, #tpu.memory_space<smem>>, %arg2: memref<1x8x32xbf16, #tpu.memory_space<vmem>>, %arg3: memref<1x32xf32, #tpu.memory_space<vmem>>, %arg4: memref<1x32xf32, #tpu.memory_space<vmem>>, %arg5: memref<32x96xbf16, #tpu.memory_space<vmem>>, %arg6: memref<1x96xf32, #tpu.memory_space<vmem>>, %arg7: memref<32x32xbf16, #tpu.memory_space<vmem>>, %arg8: memref<1x32xf32, #tpu.memory_space<vmem>>, %arg9: memref<1x32xf32, #tpu.memory_space<vmem>>, %arg10: memref<1x32xf32, #tpu.memory_space<vmem>>, %arg11: memref<32x64xbf16, #tpu.memory_space<vmem>>, %arg12: memref<1x64xf32, #tpu.memory_space<vmem>>, %arg13: memref<64x32xbf16, #tpu.memory_space<vmem>>, %arg14: memref<1x32xf32, #tpu.memory_space<vmem>>, %arg15: memref<1x32xf32, #tpu.memory_space<vmem>>, %arg16: memref<1x32xf32, #tpu.memory_space<vmem>>, %arg17: memref<32x32xbf16, #tpu.memory_space<vmem>>, %arg18: memref<1x32xf32, #tpu.memory_space<vmem>>, %arg19: memref<32x128xbf16, #tpu.memory_space<vmem>>, %arg20: memref<1x128xf32, #tpu.memory_space<vmem>>, %arg21: memref<1x1x128xf32, #tpu.memory_space<vmem>>) attributes {dimension_semantics = [#tpu.dimension_semantics<parallel>], iteration_bounds = array<i64: 2>, scalar_prefetch = 1 : i64, scratch_operands = 0 : i64, tpu.core_type = #tpu.core_type<tc>, window_params = [{transform_indices = @transform_0, window_bounds = array<i64: 1, 8, 32>}, {pipeline_mode = #tpu.pipeline_mode<synchronous>, transform_indices = @transform_1, window_bounds = array<i64: 1, 32>}, {pipeline_mode = #tpu.pipeline_mode<synchronous>, transform_indices = @transform_2, window_bounds = array<i64: 1, 32>}, {pipeline_mode = #tpu.pipeline_mode<synchronous>, transform_indices = @transform_3, window_bounds = array<i64: 32, 96>}, {pipeline_mode = #tpu.pipeline_mode<synchronous>, transform_indices = @transform_4, window_bounds = array<i64: 1, 96>}, {pipeline_mode = #tpu.pipeline_mode<synchronous>, transform_indices = @transform_5, window_bounds = array<i64: 32, 32>}, {pipeline_mode = #tpu.pipeline_mode<synchronous>, transform_indices = @transform_6, window_bounds = array<i64: 1, 32>}, {pipeline_mode = #tpu.pipeline_mode<synchronous>, transform_indices = @transform_7, window_bounds = array<i64: 1, 32>}, {pipeline_mode = #tpu.pipeline_mode<synchronous>, transform_indices = @transform_8, window_bounds = array<i64: 1, 32>}, {pipeline_mode = #tpu.pipeline_mode<synchronous>, transform_indices = @transform_9, window_bounds = array<i64: 32, 64>}, {pipeline_mode = #tpu.pipeline_mode<synchronous>, transform_indices = @transform_10, window_bounds = array<i64: 1, 64>}, {pipeline_mode = #tpu.pipeline_mode<synchronous>, transform_indices = @transform_11, window_bounds = array<i64: 64, 32>}, {pipeline_mode = #tpu.pipeline_mode<synchronous>, transform_indices = @transform_12, window_bounds = array<i64: 1, 32>}, {pipeline_mode = #tpu.pipeline_mode<synchronous>, transform_indices = @transform_13, window_bounds = array<i64: 1, 32>}, {pipeline_mode = #tpu.pipeline_mode<synchronous>, transform_indices = @transform_14, window_bounds = array<i64: 1, 32>}, {pipeline_mode = #tpu.pipeline_mode<synchronous>, transform_indices = @transform_15, window_bounds = array<i64: 32, 32>}, {pipeline_mode = #tpu.pipeline_mode<synchronous>, transform_indices = @transform_16, window_bounds = array<i64: 1, 32>}, {pipeline_mode = #tpu.pipeline_mode<synchronous>, transform_indices = @transform_17, window_bounds = array<i64: 32, 128>}, {pipeline_mode = #tpu.pipeline_mode<synchronous>, transform_indices = @transform_18, window_bounds = array<i64: 1, 128>}, {transform_indices = @transform_19, window_bounds = array<i64: 1, 1, 128>}]} {
    %0 = arith.index_cast %arg0 : i32 to index
    %1 = memref.load %arg1[%0] : memref<2xi32, #tpu.memory_space<smem>>
    %c0 = arith.constant 0 : index
    %c0_0 = arith.constant 0 : index
    %c0_1 = arith.constant 0 : index
    %2 = vector.load %arg2[%c0, %c0_0, %c0_1] : memref<1x8x32xbf16, #tpu.memory_space<vmem>>, vector<1x8x32xbf16>
    %3 = vector.shape_cast %2 : vector<1x8x32xbf16> to vector<8x32xbf16>
    %4 = arith.extf %3 : vector<8x32xbf16> to vector<8x32xf32>
    %c0_2 = arith.constant 0 : index
    %c0_3 = arith.constant 0 : index
    %5 = vector.load %arg3[%c0_2, %c0_3] : memref<1x32xf32, #tpu.memory_space<vmem>>, vector<1x32xf32>
    %c0_4 = arith.constant 0 : index
    %c0_5 = arith.constant 0 : index
    %6 = vector.load %arg4[%c0_4, %c0_5] : memref<1x32xf32, #tpu.memory_space<vmem>>, vector<1x32xf32>
    %cst = arith.constant dense<0.000000e+00> : vector<8xf32>
    %7 = vector.multi_reduction <add>, %4, %cst [1] : vector<8x32xf32> to vector<8xf32>
    %8 = vector.shape_cast %7 : vector<8xf32> to vector<8x1xf32>
    %cst_6 = arith.constant 3.200000e+01 : f32
    %9 = vector.broadcast %cst_6 : f32 to vector<8x1xf32>
    %10 = arith.divf %8, %9 : vector<8x1xf32>
    %11 = vector.broadcast %10 : vector<8x1xf32> to vector<8x32xf32>
    %12 = arith.subf %4, %11 : vector<8x32xf32>
    %13 = arith.mulf %12, %12 : vector<8x32xf32>
    %cst_7 = arith.constant dense<0.000000e+00> : vector<8xf32>
    %14 = vector.multi_reduction <add>, %13, %cst_7 [1] : vector<8x32xf32> to vector<8xf32>
    %15 = vector.shape_cast %14 : vector<8xf32> to vector<8x1xf32>
    %cst_8 = arith.constant 3.200000e+01 : f32
    %16 = vector.broadcast %cst_8 : f32 to vector<8x1xf32>
    %17 = arith.divf %15, %16 : vector<8x1xf32>
    %cst_9 = arith.constant 9.99999996E-13 : f32
    %18 = vector.broadcast %cst_9 : f32 to vector<8x1xf32>
    %19 = arith.addf %17, %18 : vector<8x1xf32>
    %20 = math.rsqrt %19 : vector<8x1xf32>
    %21 = vector.broadcast %20 : vector<8x1xf32> to vector<8x32xf32>
    %22 = arith.mulf %12, %21 : vector<8x32xf32>
    %23 = vector.broadcast %5 : vector<1x32xf32> to vector<8x32xf32>
    %24 = arith.mulf %22, %23 : vector<8x32xf32>
    %25 = vector.broadcast %6 : vector<1x32xf32> to vector<8x32xf32>
    %26 = arith.addf %24, %25 : vector<8x32xf32>
    %27 = arith.truncf %26 : vector<8x32xf32> to vector<8x32xbf16>
    %c0_10 = arith.constant 0 : index
    %c0_11 = arith.constant 0 : index
    %28 = vector.load %arg5[%c0_10, %c0_11] : memref<32x96xbf16, #tpu.memory_space<vmem>>, vector<32x96xbf16>
    %cst_12 = arith.constant dense<0.000000e+00> : vector<8x96xf32>
    %29 = tpu.matmul %27, %28, %cst_12 {dimension_numbers = #tpu.dot_dimension_numbers<[1], [0], [0], [1], [0, 0, 1, 1], [], []>} : vector<8x32xbf16>, vector<32x96xbf16>, vector<8x96xf32> -> vector<8x96xf32>
    %c0_13 = arith.constant 0 : index
    %c0_14 = arith.constant 0 : index
    %30 = vector.load %arg6[%c0_13, %c0_14] : memref<1x96xf32, #tpu.memory_space<vmem>>, vector<1x96xf32>
    %31 = vector.broadcast %30 : vector<1x96xf32> to vector<8x96xf32>
    %32 = arith.addf %29, %31 : vector<8x96xf32>
    %33 = arith.truncf %32 : vector<8x96xf32> to vector<8x96xbf16>
    %34 = tpu.iota {dimensions = array<i32: 1>} : vector<1x8xi32>
    %35 = vector.broadcast %1 : i32 to vector<1x8xi32>
    %36 = arith.cmpi slt, %34, %35 : vector<1x8xi32>
    %37 = vector.extract_strided_slice %33 {offsets = [0, 0], sizes = [8, 16], strides = [1, 1]} : vector<8x96xbf16> to vector<8x16xbf16>
    %38 = vector.extract_strided_slice %33 {offsets = [0, 32], sizes = [8, 16], strides = [1, 1]} : vector<8x96xbf16> to vector<8x16xbf16>
    %39 = vector.extract_strided_slice %33 {offsets = [0, 64], sizes = [8, 16], strides = [1, 1]} : vector<8x96xbf16> to vector<8x16xbf16>
    "tpu.trace_start"() <{level = 10 : i32, message = "qd,kd->qk"}> : () -> ()
    %cst_15 = arith.constant dense<0.000000e+00> : vector<8x8xf32>
    %40 = tpu.matmul %37, %38, %cst_15 {dimension_numbers = #tpu.dot_dimension_numbers<[1], [1], [0], [0], [0, 0, 1, 0], [], []>} : vector<8x16xbf16>, vector<8x16xbf16>, vector<8x8xf32> -> vector<8x8xf32>
    %cst_16 = arith.constant -1.000000e+09 : f32
    "tpu.trace_stop"() : () -> ()
    %41 = vector.shape_cast %36 : vector<1x8xi1> to vector<1x8xi1>
    %42 = vector.broadcast %41 : vector<1x8xi1> to vector<8x8xi1>
    %43 = vector.broadcast %cst_16 : f32 to vector<8x8xf32>
    %44 = arith.select %42, %40, %43 : vector<8x8xi1>, vector<8x8xf32>
    %cst_17 = arith.constant dense<0xFF800000> : vector<8xf32>
    %45 = vector.multi_reduction <maximumf>, %44, %cst_17 [1] : vector<8x8xf32> to vector<8xf32>
    %46 = vector.shape_cast %45 : vector<8xf32> to vector<8x1xf32>
    %47 = vector.broadcast %46 : vector<8x1xf32> to vector<8x8xf32>
    %48 = arith.subf %44, %47 : vector<8x8xf32>
    %49 = math.exp %48 : vector<8x8xf32>
    %cst_18 = arith.constant dense<0.000000e+00> : vector<8xf32>
    %50 = vector.multi_reduction <add>, %49, %cst_18 [1] : vector<8x8xf32> to vector<8xf32>
    %51 = vector.shape_cast %50 : vector<8xf32> to vector<8x1xf32>
    %52 = tpu.reciprocal %51 {approx = true} : vector<8x1xf32> -> vector<8x1xf32>
    %53 = vector.broadcast %52 : vector<8x1xf32> to vector<8x8xf32>
    %54 = arith.mulf %49, %53 : vector<8x8xf32>
    %55 = arith.truncf %54 : vector<8x8xf32> to vector<8x8xbf16>
    %cst_19 = arith.constant dense<0.000000e+00> : vector<8x16xf32>
    %56 = tpu.matmul %55, %39, %cst_19 {dimension_numbers = #tpu.dot_dimension_numbers<[1], [0], [0], [1], [0, 0, 1, 1], [], []>} : vector<8x8xbf16>, vector<8x16xbf16>, vector<8x16xf32> -> vector<8x16xf32>
    %57 = vector.extract_strided_slice %33 {offsets = [0, 16], sizes = [8, 16], strides = [1, 1]} : vector<8x96xbf16> to vector<8x16xbf16>
    %58 = vector.extract_strided_slice %33 {offsets = [0, 48], sizes = [8, 16], strides = [1, 1]} : vector<8x96xbf16> to vector<8x16xbf16>
    %59 = vector.extract_strided_slice %33 {offsets = [0, 80], sizes = [8, 16], strides = [1, 1]} : vector<8x96xbf16> to vector<8x16xbf16>
    "tpu.trace_start"() <{level = 10 : i32, message = "qd,kd->qk"}> : () -> ()
    %cst_20 = arith.constant dense<0.000000e+00> : vector<8x8xf32>
    %60 = tpu.matmul %57, %58, %cst_20 {dimension_numbers = #tpu.dot_dimension_numbers<[1], [1], [0], [0], [0, 0, 1, 0], [], []>} : vector<8x16xbf16>, vector<8x16xbf16>, vector<8x8xf32> -> vector<8x8xf32>
    %cst_21 = arith.constant -1.000000e+09 : f32
    "tpu.trace_stop"() : () -> ()
    %61 = vector.shape_cast %36 : vector<1x8xi1> to vector<1x8xi1>
    %62 = vector.broadcast %61 : vector<1x8xi1> to vector<8x8xi1>
    %63 = vector.broadcast %cst_21 : f32 to vector<8x8xf32>
    %64 = arith.select %62, %60, %63 : vector<8x8xi1>, vector<8x8xf32>
    %cst_22 = arith.constant dense<0xFF800000> : vector<8xf32>
    %65 = vector.multi_reduction <maximumf>, %64, %cst_22 [1] : vector<8x8xf32> to vector<8xf32>
    %66 = vector.shape_cast %65 : vector<8xf32> to vector<8x1xf32>
    %67 = vector.broadcast %66 : vector<8x1xf32> to vector<8x8xf32>
    %68 = arith.subf %64, %67 : vector<8x8xf32>
    %69 = math.exp %68 : vector<8x8xf32>
    %cst_23 = arith.constant dense<0.000000e+00> : vector<8xf32>
    %70 = vector.multi_reduction <add>, %69, %cst_23 [1] : vector<8x8xf32> to vector<8xf32>
    %71 = vector.shape_cast %70 : vector<8xf32> to vector<8x1xf32>
    %72 = tpu.reciprocal %71 {approx = true} : vector<8x1xf32> -> vector<8x1xf32>
    %73 = vector.broadcast %72 : vector<8x1xf32> to vector<8x8xf32>
    %74 = arith.mulf %69, %73 : vector<8x8xf32>
    %75 = arith.truncf %74 : vector<8x8xf32> to vector<8x8xbf16>
    %cst_24 = arith.constant dense<0.000000e+00> : vector<8x16xf32>
    %76 = tpu.matmul %75, %59, %cst_24 {dimension_numbers = #tpu.dot_dimension_numbers<[1], [0], [0], [1], [0, 0, 1, 1], [], []>} : vector<8x8xbf16>, vector<8x16xbf16>, vector<8x16xf32> -> vector<8x16xf32>
    %77 = tpu.concatenate %56, %76 in 1 : vector<8x16xf32>, vector<8x16xf32> -> vector<8x32xf32>
    %78 = arith.truncf %77 : vector<8x32xf32> to vector<8x32xbf16>
    %c0_25 = arith.constant 0 : index
    %c0_26 = arith.constant 0 : index
    %79 = vector.load %arg7[%c0_25, %c0_26] : memref<32x32xbf16, #tpu.memory_space<vmem>>, vector<32x32xbf16>
    %cst_27 = arith.constant dense<0.000000e+00> : vector<8x32xf32>
    %80 = tpu.matmul %78, %79, %cst_27 {dimension_numbers = #tpu.dot_dimension_numbers<[1], [0], [0], [1], [0, 0, 1, 1], [], []>} : vector<8x32xbf16>, vector<32x32xbf16>, vector<8x32xf32> -> vector<8x32xf32>
    %c0_28 = arith.constant 0 : index
    %c0_29 = arith.constant 0 : index
    %81 = vector.load %arg8[%c0_28, %c0_29] : memref<1x32xf32, #tpu.memory_space<vmem>>, vector<1x32xf32>
    %82 = vector.broadcast %81 : vector<1x32xf32> to vector<8x32xf32>
    %83 = arith.addf %80, %82 : vector<8x32xf32>
    %84 = arith.addf %83, %26 : vector<8x32xf32>
    %c0_30 = arith.constant 0 : index
    %c0_31 = arith.constant 0 : index
    %85 = vector.load %arg9[%c0_30, %c0_31] : memref<1x32xf32, #tpu.memory_space<vmem>>, vector<1x32xf32>
    %c0_32 = arith.constant 0 : index
    %c0_33 = arith.constant 0 : index
    %86 = vector.load %arg10[%c0_32, %c0_33] : memref<1x32xf32, #tpu.memory_space<vmem>>, vector<1x32xf32>
    %cst_34 = arith.constant dense<0.000000e+00> : vector<8xf32>
    %87 = vector.multi_reduction <add>, %84, %cst_34 [1] : vector<8x32xf32> to vector<8xf32>
    %88 = vector.shape_cast %87 : vector<8xf32> to vector<8x1xf32>
    %cst_35 = arith.constant 3.200000e+01 : f32
    %89 = vector.broadcast %cst_35 : f32 to vector<8x1xf32>
    %90 = arith.divf %88, %89 : vector<8x1xf32>
    %91 = vector.broadcast %90 : vector<8x1xf32> to vector<8x32xf32>
    %92 = arith.subf %84, %91 : vector<8x32xf32>
    %93 = arith.mulf %92, %92 : vector<8x32xf32>
    %cst_36 = arith.constant dense<0.000000e+00> : vector<8xf32>
    %94 = vector.multi_reduction <add>, %93, %cst_36 [1] : vector<8x32xf32> to vector<8xf32>
    %95 = vector.shape_cast %94 : vector<8xf32> to vector<8x1xf32>
    %cst_37 = arith.constant 3.200000e+01 : f32
    %96 = vector.broadcast %cst_37 : f32 to vector<8x1xf32>
    %97 = arith.divf %95, %96 : vector<8x1xf32>
    %cst_38 = arith.constant 9.99999996E-13 : f32
    %98 = vector.broadcast %cst_38 : f32 to vector<8x1xf32>
    %99 = arith.addf %97, %98 : vector<8x1xf32>
    %100 = math.rsqrt %99 : vector<8x1xf32>
    %101 = vector.broadcast %100 : vector<8x1xf32> to vector<8x32xf32>
    %102 = arith.mulf %92, %101 : vector<8x32xf32>
    %103 = vector.broadcast %85 : vector<1x32xf32> to vector<8x32xf32>
    %104 = arith.mulf %102, %103 : vector<8x32xf32>
    %105 = vector.broadcast %86 : vector<1x32xf32> to vector<8x32xf32>
    %106 = arith.addf %104, %105 : vector<8x32xf32>
    %107 = arith.truncf %106 : vector<8x32xf32> to vector<8x32xbf16>
    %c0_39 = arith.constant 0 : index
    %c0_40 = arith.constant 0 : index
    %108 = vector.load %arg11[%c0_39, %c0_40] : memref<32x64xbf16, #tpu.memory_space<vmem>>, vector<32x64xbf16>
    %cst_41 = arith.constant dense<0.000000e+00> : vector<8x64xf32>
    %109 = tpu.matmul %107, %108, %cst_41 {dimension_numbers = #tpu.dot_dimension_numbers<[1], [0], [0], [1], [0, 0, 1, 1], [], []>} : vector<8x32xbf16>, vector<32x64xbf16>, vector<8x64xf32> -> vector<8x64xf32>
    %c0_42 = arith.constant 0 : index
    %c0_43 = arith.constant 0 : index
    %110 = vector.load %arg12[%c0_42, %c0_43] : memref<1x64xf32, #tpu.memory_space<vmem>>, vector<1x64xf32>
    %111 = vector.broadcast %110 : vector<1x64xf32> to vector<8x64xf32>
    %112 = arith.addf %109, %111 : vector<8x64xf32>
    %cst_44 = arith.constant 5.000000e-01 : f32
    %113 = vector.broadcast %cst_44 : f32 to vector<8x64xf32>
    %114 = arith.mulf %113, %112 : vector<8x64xf32>
    %cst_45 = arith.constant 4.471500e-02 : f32
    %115 = vector.broadcast %cst_45 : f32 to vector<8x64xf32>
    %116 = arith.mulf %115, %112 : vector<8x64xf32>
    %117 = arith.mulf %116, %112 : vector<8x64xf32>
    %118 = arith.mulf %117, %112 : vector<8x64xf32>
    %119 = arith.addf %112, %118 : vector<8x64xf32>
    %cst_46 = arith.constant 0.797884583 : f32
    %120 = vector.broadcast %cst_46 : f32 to vector<8x64xf32>
    %121 = arith.mulf %120, %119 : vector<8x64xf32>
    %122 = math.tanh %121 : vector<8x64xf32>
    %cst_47 = arith.constant 1.000000e+00 : f32
    %123 = vector.broadcast %cst_47 : f32 to vector<8x64xf32>
    %124 = arith.addf %123, %122 : vector<8x64xf32>
    %125 = arith.mulf %114, %124 : vector<8x64xf32>
    %126 = arith.truncf %125 : vector<8x64xf32> to vector<8x64xbf16>
    %c0_48 = arith.constant 0 : index
    %c0_49 = arith.constant 0 : index
    %127 = vector.load %arg13[%c0_48, %c0_49] : memref<64x32xbf16, #tpu.memory_space<vmem>>, vector<64x32xbf16>
    %cst_50 = arith.constant dense<0.000000e+00> : vector<8x32xf32>
    %128 = tpu.matmul %126, %127, %cst_50 {dimension_numbers = #tpu.dot_dimension_numbers<[1], [0], [0], [1], [0, 0, 1, 1], [], []>} : vector<8x64xbf16>, vector<64x32xbf16>, vector<8x32xf32> -> vector<8x32xf32>
    %c0_51 = arith.constant 0 : index
    %c0_52 = arith.constant 0 : index
    %129 = vector.load %arg14[%c0_51, %c0_52] : memref<1x32xf32, #tpu.memory_space<vmem>>, vector<1x32xf32>
    %130 = vector.broadcast %129 : vector<1x32xf32> to vector<8x32xf32>
    %131 = arith.addf %128, %130 : vector<8x32xf32>
    %132 = arith.addf %131, %106 : vector<8x32xf32>
    %c0_53 = arith.constant 0 : index
    %c0_54 = arith.constant 0 : index
    %133 = vector.load %arg15[%c0_53, %c0_54] : memref<1x32xf32, #tpu.memory_space<vmem>>, vector<1x32xf32>
    %c0_55 = arith.constant 0 : index
    %c0_56 = arith.constant 0 : index
    %134 = vector.load %arg16[%c0_55, %c0_56] : memref<1x32xf32, #tpu.memory_space<vmem>>, vector<1x32xf32>
    %cst_57 = arith.constant dense<0.000000e+00> : vector<8xf32>
    %135 = vector.multi_reduction <add>, %132, %cst_57 [1] : vector<8x32xf32> to vector<8xf32>
    %136 = vector.shape_cast %135 : vector<8xf32> to vector<8x1xf32>
    %cst_58 = arith.constant 3.200000e+01 : f32
    %137 = vector.broadcast %cst_58 : f32 to vector<8x1xf32>
    %138 = arith.divf %136, %137 : vector<8x1xf32>
    %139 = vector.broadcast %138 : vector<8x1xf32> to vector<8x32xf32>
    %140 = arith.subf %132, %139 : vector<8x32xf32>
    %141 = arith.mulf %140, %140 : vector<8x32xf32>
    %cst_59 = arith.constant dense<0.000000e+00> : vector<8xf32>
    %142 = vector.multi_reduction <add>, %141, %cst_59 [1] : vector<8x32xf32> to vector<8xf32>
    %143 = vector.shape_cast %142 : vector<8xf32> to vector<8x1xf32>
    %cst_60 = arith.constant 3.200000e+01 : f32
    %144 = vector.broadcast %cst_60 : f32 to vector<8x1xf32>
    %145 = arith.divf %143, %144 : vector<8x1xf32>
    %cst_61 = arith.constant 9.99999996E-13 : f32
    %146 = vector.broadcast %cst_61 : f32 to vector<8x1xf32>
    %147 = arith.addf %145, %146 : vector<8x1xf32>
    %148 = math.rsqrt %147 : vector<8x1xf32>
    %149 = vector.broadcast %148 : vector<8x1xf32> to vector<8x32xf32>
    %150 = arith.mulf %140, %149 : vector<8x32xf32>
    %151 = vector.broadcast %133 : vector<1x32xf32> to vector<8x32xf32>
    %152 = arith.mulf %150, %151 : vector<8x32xf32>
    %153 = vector.broadcast %134 : vector<1x32xf32> to vector<8x32xf32>
    %154 = arith.addf %152, %153 : vector<8x32xf32>
    %155 = arith.truncf %154 : vector<8x32xf32> to vector<8x32xbf16>
    %c0_62 = arith.constant 0 : index
    %c0_63 = arith.constant 0 : index
    %156 = vector.load %arg17[%c0_62, %c0_63] : memref<32x32xbf16, #tpu.memory_space<vmem>>, vector<32x32xbf16>
    %cst_64 = arith.constant dense<0.000000e+00> : vector<8x32xf32>
    %157 = tpu.matmul %155, %156, %cst_64 {dimension_numbers = #tpu.dot_dimension_numbers<[1], [0], [0], [1], [0, 0, 1, 1], [], []>} : vector<8x32xbf16>, vector<32x32xbf16>, vector<8x32xf32> -> vector<8x32xf32>
    %c0_65 = arith.constant 0 : index
    %c0_66 = arith.constant 0 : index
    %158 = vector.load %arg18[%c0_65, %c0_66] : memref<1x32xf32, #tpu.memory_space<vmem>>, vector<1x32xf32>
    %159 = vector.broadcast %158 : vector<1x32xf32> to vector<8x32xf32>
    %160 = arith.addf %157, %159 : vector<8x32xf32>
    %161 = math.tanh %160 : vector<8x32xf32>
    %162 = arith.truncf %161 : vector<8x32xf32> to vector<8x32xbf16>
    %c0_67 = arith.constant 0 : index
    %c0_68 = arith.constant 0 : index
    %163 = vector.load %arg19[%c0_67, %c0_68] : memref<32x128xbf16, #tpu.memory_space<vmem>>, vector<32x128xbf16>
    %cst_69 = arith.constant dense<0.000000e+00> : vector<8x128xf32>
    %164 = tpu.matmul %162, %163, %cst_69 {dimension_numbers = #tpu.dot_dimension_numbers<[1], [0], [0], [1], [0, 0, 1, 1], [], []>} : vector<8x32xbf16>, vector<32x128xbf16>, vector<8x128xf32> -> vector<8x128xf32>
    %c0_70 = arith.constant 0 : index
    %c0_71 = arith.constant 0 : index
    %165 = vector.load %arg20[%c0_70, %c0_71] : memref<1x128xf32, #tpu.memory_space<vmem>>, vector<1x128xf32>
    %166 = vector.broadcast %165 : vector<1x128xf32> to vector<8x128xf32>
    %167 = arith.addf %164, %166 : vector<8x128xf32>
    %168 = vector.extract_strided_slice %167 {offsets = [0, 0], sizes = [1, 128], strides = [1, 1]} : vector<8x128xf32> to vector<1x128xf32>
    %c0_72 = arith.constant 0 : index
    %c0_73 = arith.constant 0 : index
    %c0_74 = arith.constant 0 : index
    %169 = vector.load %arg21[%c0_72, %c0_73, %c0_74] : memref<1x1x128xf32, #tpu.memory_space<vmem>>, vector<1x1x128xf32>
    %170 = vector.shape_cast %169 : vector<1x1x128xf32> to vector<1x128xf32>
    %171 = vector.shape_cast %168 : vector<1x128xf32> to vector<1x1x128xf32>
    tpu.vector_store %arg21[%c0_72, %c0_73, %c0_74], %171 {strides = array<i32>} : memref<1x1x128xf32, #tpu.memory_space<vmem>>, vector<1x1x128xf32>,
    return
  }
  func.func @transform_0(%arg0: i32, %arg1: memref<2xi32, #tpu.memory_space<smem>>) -> (i32, i32, i32) {
    %c0_i32 = arith.constant 0 : i32
    %c0_i32_0 = arith.constant 0 : i32
    %c0_i32_1 = arith.constant 0 : i32
    return %arg0, %c0_i32, %c0_i32_0 : i32, i32, i32
  }
  func.func @transform_1(%arg0: i32, %arg1: memref<2xi32, #tpu.memory_space<smem>>) -> (i32, i32) {
    %c0_i32 = arith.constant 0 : i32
    %c0_i32_0 = arith.constant 0 : i32
    %c0_i32_1 = arith.constant 0 : i32
    return %c0_i32, %c0_i32_0 : i32, i32
  }
  func.func @transform_2(%arg0: i32, %arg1: memref<2xi32, #tpu.memory_space<smem>>) -> (i32, i32) {
    %c0_i32 = arith.constant 0 : i32
    %c0_i32_0 = arith.constant 0 : i32
    %c0_i32_1 = arith.constant 0 : i32
    return %c0_i32, %c0_i32_0 : i32, i32
  }
  func.func @transform_3(%arg0: i32, %arg1: memref<2xi32, #tpu.memory_space<smem>>) -> (i32, i32) {
    %c0_i32 = arith.constant 0 : i32
    %c0_i32_0 = arith.constant 0 : i32
    %c0_i32_1 = arith.constant 0 : i32
    return %c0_i32, %c0_i32_0 : i32, i32
  }
  func.func @transform_4(%arg0: i32, %arg1: memref<2xi32, #tpu.memory_space<smem>>) -> (i32, i32) {
    %c0_i32 = arith.constant 0 : i32
    %c0_i32_0 = arith.constant 0 : i32
    %c0_i32_1 = arith.constant 0 : i32
    return %c0_i32, %c0_i32_0 : i32, i32
  }
  func.func @transform_5(%arg0: i32, %arg1: memref<2xi32, #tpu.memory_space<smem>>) -> (i32, i32) {
    %c0_i32 = arith.constant 0 : i32
    %c0_i32_0 = arith.constant 0 : i32
    %c0_i32_1 = arith.constant 0 : i32
    return %c0_i32, %c0_i32_0 : i32, i32
  }
  func.func @transform_6(%arg0: i32, %arg1: memref<2xi32, #tpu.memory_space<smem>>) -> (i32, i32) {
    %c0_i32 = arith.constant 0 : i32
    %c0_i32_0 = arith.constant 0 : i32
    %c0_i32_1 = arith.constant 0 : i32
    return %c0_i32, %c0_i32_0 : i32, i32
  }
  func.func @transform_7(%arg0: i32, %arg1: memref<2xi32, #tpu.memory_space<smem>>) -> (i32, i32) {
    %c0_i32 = arith.constant 0 : i32
    %c0_i32_0 = arith.constant 0 : i32
    %c0_i32_1 = arith.constant 0 : i32
    return %c0_i32, %c0_i32_0 : i32, i32
  }
  func.func @transform_8(%arg0: i32, %arg1: memref<2xi32, #tpu.memory_space<smem>>) -> (i32, i32) {
    %c0_i32 = arith.constant 0 : i32
    %c0_i32_0 = arith.constant 0 : i32
    %c0_i32_1 = arith.constant 0 : i32
    return %c0_i32, %c0_i32_0 : i32, i32
  }
  func.func @transform_9(%arg0: i32, %arg1: memref<2xi32, #tpu.memory_space<smem>>) -> (i32, i32) {
    %c0_i32 = arith.constant 0 : i32
    %c0_i32_0 = arith.constant 0 : i32
    %c0_i32_1 = arith.constant 0 : i32
    return %c0_i32, %c0_i32_0 : i32, i32
  }
  func.func @transform_10(%arg0: i32, %arg1: memref<2xi32, #tpu.memory_space<smem>>) -> (i32, i32) {
    %c0_i32 = arith.constant 0 : i32
    %c0_i32_0 = arith.constant 0 : i32
    %c0_i32_1 = arith.constant 0 : i32
    return %c0_i32, %c0_i32_0 : i32, i32
  }
  func.func @transform_11(%arg0: i32, %arg1: memref<2xi32, #tpu.memory_space<smem>>) -> (i32, i32) {
    %c0_i32 = arith.constant 0 : i32
    %c0_i32_0 = arith.constant 0 : i32
    %c0_i32_1 = arith.constant 0 : i32
    return %c0_i32, %c0_i32_0 : i32, i32
  }
  func.func @transform_12(%arg0: i32, %arg1: memref<2xi32, #tpu.memory_space<smem>>) -> (i32, i32) {
    %c0_i32 = arith.constant 0 : i32
    %c0_i32_0 = arith.constant 0 : i32
    %c0_i32_1 = arith.constant 0 : i32
    return %c0_i32, %c0_i32_0 : i32, i32
  }
  func.func @transform_13(%arg0: i32, %arg1: memref<2xi32, #tpu.memory_space<smem>>) -> (i32, i32) {
    %c0_i32 = arith.constant 0 : i32
    %c0_i32_0 = arith.constant 0 : i32
    %c0_i32_1 = arith.constant 0 : i32
    return %c0_i32, %c0_i32_0 : i32, i32
  }
  func.func @transform_14(%arg0: i32, %arg1: memref<2xi32, #tpu.memory_space<smem>>) -> (i32, i32) {
    %c0_i32 = arith.constant 0 : i32
    %c0_i32_0 = arith.constant 0 : i32
    %c0_i32_1 = arith.constant 0 : i32
    return %c0_i32, %c0_i32_0 : i32, i32
  }
  func.func @transform_15(%arg0: i32, %arg1: memref<2xi32, #tpu.memory_space<smem>>) -> (i32, i32) {
    %c0_i32 = arith.constant 0 : i32
    %c0_i32_0 = arith.constant 0 : i32
    %c0_i32_1 = arith.constant 0 : i32
    return %c0_i32, %c0_i32_0 : i32, i32
  }
  func.func @transform_16(%arg0: i32, %arg1: memref<2xi32, #tpu.memory_space<smem>>) -> (i32, i32) {
    %c0_i32 = arith.constant 0 : i32
    %c0_i32_0 = arith.constant 0 : i32
    %c0_i32_1 = arith.constant 0 : i32
    return %c0_i32, %c0_i32_0 : i32, i32
  }
  func.func @transform_17(%arg0: i32, %arg1: memref<2xi32, #tpu.memory_space<smem>>) -> (i32, i32) {
    %c0_i32 = arith.constant 0 : i32
    %c0_i32_0 = arith.constant 0 : i32
    %c0_i32_1 = arith.constant 0 : i32
    return %c0_i32, %c0_i32_0 : i32, i32
  }
  func.func @transform_18(%arg0: i32, %arg1: memref<2xi32, #tpu.memory_space<smem>>) -> (i32, i32) {
    %c0_i32 = arith.constant 0 : i32
    %c0_i32_0 = arith.constant 0 : i32
    %c0_i32_1 = arith.constant 0 : i32
    return %c0_i32, %c0_i32_0 : i32, i32
  }
  func.func @transform_19(%arg0: i32, %arg1: memref<2xi32, #tpu.memory_space<smem>>) -> (i32, i32, i32) {
    %c0_i32 = arith.constant 0 : i32
    %c0_i32_0 = arith.constant 0 : i32
    %c0_i32_1 = arith.constant 0 : i32
    return %arg0, %c0_i32, %c0_i32_0 : i32, i32, i32
  }
}

</mosaic_0001>

<bundles_post_ra>
// kernel: tpu_custom_call.1
= control target key start
LH: loop header
LB: loop body
LE: loop exit
PB: predicated region body
PF: predicated region fallthrough
CT: control target
= control target key end

     0   :  { %s3083_s0 = inlined_call_operand.hbm [shape: s32[2], index: 0, kind: input, shape index: {}]   ;;  %s3084_s1 = inlined_call_operand.hbm [shape: bf16[2,8,32], index: 1, kind: input, shape index: {}]   ;;  %s3085_s2 = inlined_call_operand.hbm [shape: f32[1,32], index: 2, kind: input, shape index: {}]   ;;  %s3086_s3 = inlined_call_operand.hbm [shape: f32[1,32], index: 3, kind: input, shape index: {}]   ;;  %s3087_s4 = inlined_call_operand.vmem [shape: bf16[32,96], index: 4, kind: input, shape index: {}]   ;;  %s3088_s5 = inlined_call_operand.hbm [shape: f32[1,96], index: 5, kind: input, shape index: {}]   ;;  %s3089_s6 = inlined_call_operand.vmem [shape: bf16[32,32], index: 6, kind: input, shape index: {}]   ;;  %s3090_s7 = inlined_call_operand.hbm [shape: f32[1,32], index: 7, kind: input, shape index: {}]   ;;  %s3091_s8 = inlined_call_operand.hbm [shape: f32[1,32], index: 8, kind: input, shape index: {}]   ;;  %s3092_s9 = inlined_call_operand.hbm [shape: f32[1,32], index: 9, kind: input, shape index: {}]   ;;  %s3093_s10 = inlined_call_operand.vmem [shape: bf16[32,64], index: 10, kind: input, shape index: {}]   ;;  %s3094_s11 = inlined_call_operand.hbm [shape: f32[1,64], index: 11, kind: input, shape index: {}]   ;;  %s3095_s12 = inlined_call_operand.vmem [shape: bf16[64,32], index: 12, kind: input, shape index: {}]   ;;  %s3096_s13 = inlined_call_operand.hbm [shape: f32[1,32], index: 13, kind: input, shape index: {}]   ;;  %s3097_s14 = inlined_call_operand.hbm [shape: f32[1,32], index: 14, kind: input, shape index: {}]   ;;  %s3098_s15 = inlined_call_operand.hbm [shape: f32[1,32], index: 15, kind: input, shape index: {}]   ;;  %s3099_s16 = inlined_call_operand.hbm [shape: bf16[32,32], index: 16, kind: input, shape index: {}]   ;;  %s3100_s17 = inlined_call_operand.hbm [shape: f32[1,32], index: 17, kind: input, shape index: {}]   ;;  %s3101_s18 = inlined_call_operand.vmem [shape: bf16[32,128], index: 18, kind: input, shape index: {}]   ;;  %s3102_s19 = inlined_call_operand.vmem [shape: f32[1,128], index: 19, kind: input, shape index: {}]   ;;  %s3103_s20 = inlined_call_operand.hbm [shape: f32[2,1,128], index: 20, kind: output, shape index: {}]  }
   0x1   :  { %3112 = sst [smem:[#allocation35_spill]] %s3083_s0 }
   0x2   :  { %3113 = sst [smem:[#allocation36_spill]] %s3084_s1  ;;  %s2552_s1 = smov [#allocation3]  }
   0x3   :  { %3114 = sst [smem:[#allocation37_spill]] %s3085_s2 }
   0x4   :  { %3115 = sst [smem:[#allocation38_spill]] %s3086_s3 }
   0x5   :  { %3116 = sst [smem:[#allocation39_spill]] %s3087_s4 }
   0x6   :  { %3117 = sst [smem:[#allocation40_spill]] %s3088_s5 }
   0x7   :  { %3118 = sst [smem:[#allocation41_spill]] %s3090_s7 }
   0x8   :  { %3119 = sst [smem:[#allocation42_spill]] %s3091_s8 }
   0x9   :  { %3120 = sst [smem:[#allocation43_spill]] %s3092_s9 }
   0xa   :  { %3121 = sst [smem:[#allocation44_spill]] %s3094_s11 }
   0xb   :  { %3122 = sst [smem:[#allocation45_spill]] %s3095_s12 }
   0xc   :  { %3123 = sst [smem:[#allocation46_spill]] %s3096_s13 }
   0xd   :  { %3124 = sst [smem:[#allocation47_spill]] %s3097_s14 }
   0xe   :  { %3125 = sst [smem:[#allocation48_spill]] %s3098_s15 }
   0xf   :  { %3126 = sst [smem:[#allocation49_spill]] %s3102_s19 }
  0x10   :  { %3127 = sst [smem:[#allocation50_spill]] %s3103_s20 }
  0x11   :  { %s3128_s12 = sld [smem:[#allocation35_spill]] }
  0x17   :  { %26 = dma.hbm_to_smem %s3128_s12, 16, %s2552_s1, [#allocation2] }
  0x18   :  { %2502 = dma.done.wait [#allocation2], 16 }
  0x19   :  { %2503 = vsyncadd [#allocation2], 4294967280 }
  0x1a   :  { %28 = sfence }
  0x1b   :  { %29 = vsyncpa [#allocation5], 0 }
  0x1c   :  { %31 = vsyncpa [#allocation5 + $0x1], 0 }
  0x1d   :  { %32 = vsyncpa [#allocation8], 0 }
  0x1e   :  { %33 = vsyncpa [#allocation11], 0 }
  0x1f   :  { %34 = vsyncpa [#allocation14], 0 }
  0x20   :  { %35 = vsyncpa [#allocation17], 0 }
  0x21   :  { %36 = vsyncpa [#allocation20], 0 }
  0x22   :  { %37 = vsyncpa [#allocation23], 0 }
  0x23   :  { %38 = vsyncpa [#allocation6], 0 }
  0x24   :  { %40 = vsyncpa [#allocation6 + $0x1], 0  ;;  %s2685_s24 = smov 0   ;;  %s2687_s2 = smov 0  }
  0x25   :  { %s2689_s25 = smov 0   ;;  %s2691_s12 = smov 0  }
  0x26 LB: > { %s2553_s3 = smov [#allocation7]   ;;  %s2706_s27 = sadd.s32 4294967295, %s2550_s12   ;;  %s2550_s12 = sphi %s2691_s12, %s3173_s12   ;;  %s2546_s25 = sphi %s2689_s25, %s3172_s25   ;;  %s2542_s2 = sphi %s2687_s2, %s3171_s2   ;;  %s2538_s24 = sphi %s2685_s24, %s3170_s24  }
  0x27   : > { %s494_s26 = sshll.u32 %s2553_s3, 4  ;;  %p1729_p0 = scmp.ge.s32.totalorder %s2550_s12, 1  ;;  %s495_s26 = int_to_ptr.vmem [resolvable:$true] %s494_s26 }
  0x28   : > { %p3108_p1 = scmp.eq.s32.totalorder %s2706_s27, 0  ;;  %p481_p2 = scmp.lt.s32.totalorder %s2550_s12, 3 }
  0x29   : > { %s2554_s4 = smov [#allocation10]   ;;  %s2555_s30 = smov [#allocation13]  }
  0x2a   : > { %p2711_p3 = pnand %p1729_p0, %p481_p2  ;;  %s519_s29 = sshll.u32 %s2554_s4, 4  ;;  %s2718_s29 = int_to_ptr.vmem [resolvable:$true] %s519_s29 }
  0x2b   : > { %s544_s0 = sshll.u32 %s2555_s30, 4  ;;  %s2556_s1 = smov [#allocation16]   ;;  %s2726_s0 = int_to_ptr.vmem [resolvable:$true] %s544_s0 }
  0x2c   : > { %s3129_s28 = scalar_select %p2711_p3, 1, 0 }
  0x2d   : > { %p1954_p5 = pneg %p2711_p3  ;;  %s2728_s22 = sshll.u32 %s2556_s1, 4  ;;  %s570_s22 = int_to_ptr.vmem [resolvable:$true] %s2728_s22 }
  0x2e   : > { %s2131_s3 = scalar_lea.vmem %s495_s26, 16  ;;  %s2138_s4 = scalar_lea.vmem %s495_s26, 32 }
  0x2f   : > { %p2722_p6 = pnand %p1954_p5, %p3108_p1  ;;  %p2132_p8 = scmp.ne.s32.totalorder %s495_s26, %s2131_s3 }
  0x30   : > { %p2139_p11 = scmp.lt.s32.totalorder %s495_s26, %s495_s26  ;;  %p2140_p12 = scmp.lt.s32.totalorder %s2138_s4, %s2131_s3 }
  0x31   : > { %p2732_p7 = pneg %p2722_p6 }
  0x32   : > { %p2141_p13 = por %p2140_p12, %p2139_p11 }
  0x33   : > { %p2134_p9 = pnand %p2132_p8, %p2732_p7 }
  0x35   : > { %p2135_p10 = pneg %p2134_p9 }
  0x37   : > { %p2142_p0 = pnand %p2141_p13, %p2135_p10 }
  0x39   : > { %2145 = shalt.err (!%p2142_p0)
}
  0x3a   : > { %s3132_s20 = sld [smem:[#allocation37_spill]]  ;;  %s2157_s19 = scalar_lea.vmem %s2718_s29, 16 }
  0x3b   : > { %p2158_p2 = scmp.ne.s32.totalorder %s2718_s29, %s2157_s19  ;;  %s2164_s3 = scalar_lea.vmem %s2718_s29, 32 }
  0x3c   : > { %p2165_p9 = scmp.lt.s32.totalorder %s2718_s29, %s2718_s29  ;;  %p2166_p10 = scmp.lt.s32.totalorder %s2164_s3, %s2157_s19 }
  0x3d   : > { %p2160_p5 = pnand %p2158_p2, %p2732_p7 }
  0x3e   : > { %p2167_p11 = por %p2166_p10, %p2165_p9 }
  0x3f   : > { %p2161_p8 = pneg %p2160_p5 }
  0x40   : > { %1957 = dma.hbm_to_vmem [thread:$0]  (!%p2722_p6), %s3132_s20, 16, %s495_s26, [#allocation8]  }
  0x41   : > { %p2168_p12 = pnand %p2167_p11, %p2161_p8 }
  0x43   : > { %2171 = shalt.err (!%p2168_p12)
}
  0x44   : > { %s3133_s5 = sld [smem:[#allocation40_spill]]  ;;  %s2183_s20 = scalar_lea.vmem %s2726_s0, 16 }
  0x45   : > { %p2184_p13 = scmp.ne.s32.totalorder %s2726_s0, %s2183_s20  ;;  %s2190_s19 = scalar_lea.vmem %s2726_s0, 32 }
  0x46   : > { %p2191_p5 = scmp.lt.s32.totalorder %s2726_s0, %s2726_s0  ;;  %p2192_p8 = scmp.lt.s32.totalorder %s2190_s19, %s2183_s20 }
  0x47   : > { %p2186_p0 = pnand %p2184_p13, %p2732_p7 }
  0x48   : > { %p2193_p9 = por %p2192_p8, %p2191_p5 }
  0x49   : > { %p2187_p2 = pneg %p2186_p0 }
  0x4a   : > { %1963 = dma.hbm_to_vmem [thread:$0]  (!%p2722_p6), %s3133_s5, 16, %s2718_s29, [#allocation11]  }
  0x4b   : > { %p2194_p10 = pnand %p2193_p9, %p2187_p2 }
  0x4d   : > { %2197 = shalt.err (!%p2194_p10)
}
  0x4e   : > { %s3134_s8 = sld [smem:[#allocation42_spill]]  ;;  %s2557_s29 = smov [#allocation19]  }
  0x4f   : > { %s594_s3 = sshll.u32 %s2557_s29, 4  ;;  %s2209_s4 = scalar_lea.vmem %s570_s22, 16  ;;  %s595_s3 = int_to_ptr.vmem [resolvable:$true] %s594_s3 }
  0x50   : > { %p2210_p11 = scmp.ne.s32.totalorder %s570_s22, %s2209_s4  ;;  %s2216_s30 = scalar_lea.vmem %s570_s22, 32 }
  0x51   : > { %p2217_p0 = scmp.lt.s32.totalorder %s570_s22, %s570_s22  ;;  %p2218_p2 = scmp.lt.s32.totalorder %s2216_s30, %s2209_s4 }
  0x52   : > { %p2212_p12 = pnand %p2210_p11, %p2732_p7 }
  0x53   : > { %p2219_p5 = por %p2218_p2, %p2217_p0 }
  0x54   : > { %1969 = dma.hbm_to_vmem [thread:$0]  (!%p2722_p6), %s3134_s8, 16, %s2726_s0, [#allocation14]  }
  0x55   : > { %p2213_p13 = pneg %p2212_p12 }
  0x57   : > { %p2220_p8 = pnand %p2219_p5, %p2213_p13 }
  0x59   : > { %2223 = shalt.err (!%p2220_p8)
}
  0x5a   : > { %s3135_s11 = sld [smem:[#allocation44_spill]]  ;;  %s2235_s0 = scalar_lea.vmem %s595_s3, 16 }
  0x5b   : > { %p2236_p9 = scmp.ne.s32.totalorder %s595_s3, %s2235_s0  ;;  %s2242_s26 = scalar_lea.vmem %s595_s3, 32 }
  0x5c   : > { %p2243_p12 = scmp.lt.s32.totalorder %s595_s3, %s595_s3  ;;  %p2244_p4 = scmp.lt.s32.totalorder %s2242_s26, %s2235_s0 }
  0x5d   : > { %p2238_p10 = pnand %p2236_p9, %p2732_p7 }
  0x5e   : > { %p2245_p1 = por %p2244_p4, %p2243_p12 }
  0x5f   : > { %p2239_p11 = pneg %p2238_p10 }
  0x60   : > { %1975 = dma.hbm_to_vmem [thread:$0]  (!%p2722_p6), %s3135_s11, 16, %s570_s22, [#allocation17]  }
  0x61   : > { %p2246_p0 = pnand %p2245_p1, %p2239_p11 }
  0x63   : > { %2249 = shalt.err (!%p2246_p0)
}
  0x64   : > { %s3136_s14 = sld [smem:[#allocation47_spill]]  ;;  %s2558_s22 = smov [#allocation22]  }
  0x65   : > { %s615_s4 = sshll.u32 %s2558_s22, 4  ;;  %s616_s4 = int_to_ptr.vmem [resolvable:$true] %s615_s4 }
  0x66   : > { %s2261_s30 = scalar_lea.vmem %s616_s4, 256  ;;  %p2269_p8 = scmp.lt.s32.totalorder %s616_s4, %s616_s4 }
  0x67   : > { %p2262_p13 = scmp.ne.s32.totalorder %s616_s4, %s2261_s30  ;;  %p2270_p9 = scmp.lt.s32.totalorder %s2261_s30, %s2261_s30 }
  0x69   : > { %p2264_p2 = pnand %p2262_p13, %p2732_p7  ;;  %p2271_p4 = por %p2270_p9, %p2269_p8 }
  0x6a   : > { %1981 = dma.hbm_to_vmem [thread:$0]  (!%p2722_p6), %s3136_s14, 16, %s595_s3, [#allocation20]  }
  0x6b   : > { %p2265_p5 = pneg %p2264_p2 }
  0x6d   : > { %p2272_p1 = pnand %p2271_p4, %p2265_p5 }
  0x6f   : > { %2275 = shalt.err (!%p2272_p1)
}
  0x70   : > { %s2559_s20 = smov 64   ;;  %s2560_s19 = smov 4  }
  0x71   : > { %1987 = dma.hbm_to_vmem [thread:$0]  (!%p2722_p6), %s3099_s16, 256, %s616_s4, [#allocation23], %s2559_s20, %s2559_s20, %s2560_s19  }
  0x72   : > { %s2561_s26 = smov [#allocation9]   ;;  %s2562_s29 = smov [#allocation12]  }
  0x73   : > { %s505_s1 = sshll.u32 %s2561_s26, 4  ;;  %s533_s22 = sshll.u32 %s2562_s29, 4  ;;  %s506_s1 = int_to_ptr.vmem [resolvable:$true] %s505_s1  ;;  %s534_s22 = int_to_ptr.vmem [resolvable:$true] %s533_s22 }
  0x74   : > { %s2287_s5 = scalar_lea.vmem %s506_s1, 16  ;;  %s2294_s30 = scalar_lea.vmem %s506_s1, 32 }
  0x75   : > { %p2288_p10 = scmp.ne.s32.totalorder %s506_s1, %s2287_s5  ;;  %p2295_p0 = scmp.lt.s32.totalorder %s506_s1, %s506_s1 }
  0x76   : > { %p2296_p13 = scmp.lt.s32.totalorder %s2294_s30, %s2287_s5 }
  0x77   : > { %p2290_p11 = pnand %p2288_p10, %p2732_p7 }
  0x78   : > { %p2297_p2 = por %p2296_p13, %p2295_p0 }
  0x79   : > { %p2291_p12 = pneg %p2290_p11 }
  0x7b   : > { %p2298_p5 = pnand %p2297_p2, %p2291_p12 }
  0x7d   : > { %2301 = shalt.err (!%p2298_p5)
}
  0x7e   : > { %s3137_s19 = sld [smem:[#allocation38_spill]]  ;;  %s2313_s0 = scalar_lea.vmem %s534_s22, 16 }
  0x7f   : > { %p2314_p8 = scmp.ne.s32.totalorder %s534_s22, %s2313_s0  ;;  %s2320_s3 = scalar_lea.vmem %s534_s22, 32 }
  0x80   : > { %p2321_p1 = scmp.lt.s32.totalorder %s534_s22, %s534_s22  ;;  %p2322_p10 = scmp.lt.s32.totalorder %s2320_s3, %s2313_s0 }
  0x81   : > { %p2316_p9 = pnand %p2314_p8, %p2732_p7 }
  0x82   : > { %p2323_p11 = por %p2322_p10, %p2321_p1 }
  0x83   : > { %p2317_p4 = pneg %p2316_p9 }
  0x84   : > { %1960 = dma.hbm_to_vmem [thread:$0]  (!%p2722_p6), %s3137_s19, 16, %s506_s1, [#allocation8]  }
  0x85   : > { %p2324_p3 = pnand %p2323_p11, %p2317_p4 }
  0x87   : > { %2327 = shalt.err (!%p2324_p3)
}
  0x88   : > { %s3138_s7 = sld [smem:[#allocation41_spill]]  ;;  %s2563_s29 = smov [#allocation15]  }
  0x89   : > { %s555_s1 = sshll.u32 %s2563_s29, 4  ;;  %s2564_s30 = smov [#allocation18]   ;;  %s556_s1 = int_to_ptr.vmem [resolvable:$true] %s555_s1 }
  0x8a   : > { %s583_s4 = sshll.u32 %s2564_s30, 4  ;;  %s2339_s20 = scalar_lea.vmem %s556_s1, 16  ;;  %s584_s4 = int_to_ptr.vmem [resolvable:$true] %s583_s4 }
  0x8b   : > { %p2340_p12 = scmp.ne.s32.totalorder %s556_s1, %s2339_s20  ;;  %s2346_s19 = scalar_lea.vmem %s556_s1, 32 }
  0x8c   : > { %p2347_p3 = scmp.lt.s32.totalorder %s556_s1, %s556_s1  ;;  %p2348_p2 = scmp.lt.s32.totalorder %s2346_s19, %s2339_s20 }
  0x8d   : > { %p2342_p0 = pnand %p2340_p12, %p2732_p7 }
  0x8e   : > { %1966 = dma.hbm_to_vmem [thread:$0]  (!%p2722_p6), %s3138_s7, 16, %s534_s22, [#allocation11]  }
  0x8f   : > { %p2343_p13 = pneg %p2342_p0  ;;  %p2349_p5 = por %p2348_p2, %p2347_p3 }
  0x91   : > { %p2350_p8 = pnand %p2349_p5, %p2343_p13 }
  0x93   : > { %2353 = shalt.err (!%p2350_p8)
}
  0x94   : > { %s3139_s9 = sld [smem:[#allocation43_spill]]  ;;  %s2365_s3 = scalar_lea.vmem %s584_s4, 16 }
  0x95   : > { %p2366_p9 = scmp.ne.s32.totalorder %s584_s4, %s2365_s3  ;;  %s2372_s5 = scalar_lea.vmem %s584_s4, 32 }
  0x96   : > { %p2373_p10 = scmp.lt.s32.totalorder %s584_s4, %s584_s4  ;;  %p2374_p11 = scmp.lt.s32.totalorder %s2372_s5, %s2365_s3 }
  0x97   : > { %p2368_p4 = pnand %p2366_p9, %p2732_p7 }
  0x98   : > { %p2375_p12 = por %p2374_p11, %p2373_p10 }
  0x99   : > { %p2369_p1 = pneg %p2368_p4 }
  0x9a   : > { %1972 = dma.hbm_to_vmem [thread:$0]  (!%p2722_p6), %s3139_s9, 16, %s556_s1, [#allocation14]  }
  0x9b   : > { %p2376_p0 = pnand %p2375_p12, %p2369_p1 }
  0x9d   : > { %2379 = shalt.err (!%p2376_p0)
}
  0x9e   : > { %s3140_s13 = sld [smem:[#allocation46_spill]]  ;;  %s2565_s30 = smov [#allocation21]  }
  0x9f   : > { %s605_s1 = sshll.u32 %s2565_s30, 4  ;;  %s2566_s20 = smov [#allocation24]   ;;  %s606_s1 = int_to_ptr.vmem [resolvable:$true] %s605_s1 }
  0xa0   : > { %s629_s19 = sshll.u32 %s2566_s20, 4  ;;  %s2391_s22 = scalar_lea.vmem %s606_s1, 16  ;;  %s630_s19 = int_to_ptr.vmem [resolvable:$true] %s629_s19 }
  0xa1   : > { %p2392_p13 = scmp.ne.s32.totalorder %s606_s1, %s2391_s22  ;;  %s2398_s0 = scalar_lea.vmem %s606_s1, 32 }
  0xa2   : > { %p2399_p5 = scmp.lt.s32.totalorder %s606_s1, %s606_s1  ;;  %p2400_p8 = scmp.lt.s32.totalorder %s2398_s0, %s2391_s22 }
  0xa3   : > { %p2394_p3 = pnand %p2392_p13, %p2732_p7 }
  0xa4   : > { %1978 = dma.hbm_to_vmem [thread:$0]  (!%p2722_p6), %s3140_s13, 16, %s584_s4, [#allocation17]  }
  0xa5   : > { %p2395_p2 = pneg %p2394_p3  ;;  %p2401_p9 = por %p2400_p8, %p2399_p5 }
  0xa7   : > { %p2402_p4 = pnand %p2401_p9, %p2395_p2 }
  0xa9   : > { %2405 = shalt.err (!%p2402_p4)
}
  0xaa   : > { %s3141_s15 = sld [smem:[#allocation48_spill]]  ;;  %s2417_s5 = scalar_lea.vmem %s630_s19, 16 }
  0xab   : > { %p2418_p1 = scmp.ne.s32.totalorder %s630_s19, %s2417_s5  ;;  %s2424_s26 = scalar_lea.vmem %s630_s19, 32 }
  0xac   : > { %p2425_p12 = scmp.lt.s32.totalorder %s630_s19, %s630_s19  ;;  %p2426_p0 = scmp.lt.s32.totalorder %s2424_s26, %s2417_s5 }
  0xad   : > { %p2420_p10 = pnand %p2418_p1, %p2732_p7 }
  0xae   : > { %p2427_p13 = por %p2426_p0, %p2425_p12 }
  0xaf   : > { %p2421_p11 = pneg %p2420_p10 }
  0xb0   : > { %1984 = dma.hbm_to_vmem [thread:$0]  (!%p2722_p6), %s3141_s15, 16, %s606_s1, [#allocation20]  }
  0xb1   : > { %p2428_p3 = pnand %p2427_p13, %p2421_p11 }
  0xb3   : > { %2431 = shalt.err (!%p2428_p3)
}
  0xb4   : > { %1990 = dma.hbm_to_vmem [thread:$0]  (!%p2722_p6), %s3100_s17, 16, %s630_s19, [#allocation23]  }
  0xb5   : > { %s1728_s23 = sadd.s32 4294967294, %s2550_s12   ;;  %s2835_s21 = sadd.s32 1, %s2550_s12  }
  0xb6   : > { %s50_s1 = ssub.s32 %s2550_s12, %s2835_s21  ;;  %s53_s20 = sadd.s32 1, %s2546_s25 }
  0xb7   : > { %p51_p7 = scmp.eq.s32.totalorder %s50_s1, 0  ;;  %p60_p2 = scmp.ne.s32.totalorder %s2546_s25, %s2542_s2 }
  0xb8   : > { %p61_p5 = scmp.eq.s32.totalorder %s2550_s12, 0  ;;  %p66_p8 = scmp.ne.s32.totalorder %s2542_s2, %s2538_s24 }
  0xb9   : > { %s2846_s22 = scalar_select %p51_p7, %s2546_s25, %s53_s20  }
  0xba   : > { %p2848_p9 = por %p61_p5, %p60_p2  ;;  %p3143_p4 = scmp.eq.s32.totalorder %s2706_s27, 0 }
  0xbb   : > { %p468_p1 = scmp.eq.s32.totalorder %s2706_s27, 1  ;;  %p474_p10 = scmp.eq.s32.totalorder %s1728_s23, 1 }
  0xbc   : > { %p2854_p6 = por %p3143_p4, %p66_p8  ;;  %p2011_p11 = scmp.lt.s32.totalorder %s2550_s12, 2 }
  0xbd   : > { %s646_s4 = sand.u32 1, %s2546_s25   ;;  %p2861_p12 = por %p468_p1, %p60_p2 }
  0xbe   : > { %s3144_s19 = scalar_select %p2854_p6, 1, 0 }
  0xbf   : > { %s3145_s3 = scalar_select %p2861_p12, 1, 0 }
  0xc0   : > { %p2865_p0 = por %p474_p10, %p66_p8  ;;  %s1743_s26 = sshll.u32 %s646_s4, 2 }
  0xc1   : > { %s1744_s29 = sshll.u32 %s2550_s12, 6  ;;  %s3147_s20 = sld [smem:[#allocation36_spill]] }
  0xc2   : > { %s3146_s5 = scalar_select %p2865_p0, 1, 0 }
  0xc3   : > { %s650_s23 = scalar_lea.vmem [#allocation4], %s1743_s26  ;;  %p2877_p13 = pnand %p2011_p11, %p2848_p9 }
  0xc4   : > { %s657_s8 = sshll.u32 %s650_s23, 4  ;;  %s647_s11 = scalar_lea.sflag [#allocation5], %s646_s4  ;;  %s658_s8 = int_to_ptr.vmem [resolvable:$true] %s657_s8 }
  0xc5   : > { %p2434_p7 = pneg %p2877_p13 }
  0xc7   : > { %s2873_s7 = scalar_lea.hbm %s3147_s20, %s1744_s29  ;;  %s2437_s1 = scalar_lea.hbm %s3147_s20, 128 }
  0xc8   : > { %s2432_s13 = scalar_lea.hbm %s2873_s7, 64  ;;  %p2438_p8 = scmp.lt.s32.totalorder %s2873_s7, %s3147_s20 }
  0xc9   : > { %p2433_p3 = scmp.ne.s32.totalorder %s2873_s7, %s2432_s13  ;;  %p2439_p9 = scmp.lt.s32.totalorder %s2437_s1, %s2432_s13 }
  0xcb   : > { %p2435_p2 = pnand %p2434_p7, %p2433_p3  ;;  %p2440_p4 = por %p2439_p9, %p2438_p8 }
  0xcd   : > { %p2436_p5 = pneg %p2435_p2 }
  0xcf   : > { %p2441_p1 = pnand %p2440_p4, %p2436_p5 }
  0xd1   : > { %2444 = shalt.err (!%p2441_p1)
}
  0xd2   : > { %s2445_s0 = scalar_lea.vmem %s658_s8, 64  ;;  %s2567_s4 = smov [#allocation4]  }
  0xd3   : > { %p2446_p10 = scmp.ne.s32.totalorder %s658_s8, %s2445_s0  ;;  %s2450_s14 = sshll.u32 %s2567_s4, 4  ;;  %s2451_s14 = int_to_ptr.vmem [resolvable:$false] %s2450_s14 }
  0xd4   : > { %s2452_s15 = scalar_lea.vmem %s2451_s14, 128  ;;  %p2453_p3 = scmp.lt.s32.totalorder %s658_s8, %s2451_s14 }
  0xd5   : > { %p2448_p11 = pnand %p2446_p10, %p2434_p7  ;;  %p2454_p2 = scmp.lt.s32.totalorder %s2452_s15, %s2445_s0 }
  0xd7   : > { %p2449_p0 = pneg %p2448_p11  ;;  %p2455_p12 = por %p2454_p2, %p2453_p3 }
  0xd9   : > { %p2456_p6 = pnand %p2455_p12, %p2449_p0 }
  0xdb   : > { %2459 = shalt.err (!%p2456_p6)
}
  0xdc   : > { %1994 = dma.hbm_to_vmem [thread:$0]  (!%p2877_p13), %s2873_s7, 64, %s658_s8, %s647_s11  }
  0xdd   : > { %p3149_p5 = scmp.ne.s32.totalorder %s3129_s28, 0 }
  0xde   : > { %s2898_s13 = sand.u32 (!%p3149_p5), 1, %s2542_s2   ;;  %p3150_p7 = scmp.ne.s32.totalorder (!%p3149_p5), %s3144_s19, 0 }
  0xdf   : > { %666 = sbr.rel (%p3149_p5) target bundleno = 3366 (0xd26), region = 96  ;;  %s1746_s29 = sshll.u32 (!%p3149_p5), %s2898_s13, 2 }
  0xe0   : > { %s669_s30 = scalar_lea.sflag (!%p3149_p5), [#allocation5], %s2898_s13  ;;  %s672_s14 = scalar_lea.vmem (!%p3149_p5), [#allocation4], %s1746_s29 }
  0xe4   : > { %2505 = dma.done.wait (%p3150_p7), %s669_s30, 64  }
  0xe5   : > { %2507 = vsyncadd (%p3150_p7), %s669_s30, 4294967232  ;;  %p3151_p6 = scmp.eq.s32.totalorder %s2706_s27, 0 }
  0xe7   : > { %2509 = dma.done.wait (%p3151_p6), [#allocation8], 32   ;;  %p3152_p12 = pmov %p3151_p6 }
  0xe8   : > { %p3153_p0 = pmov %p3151_p6 }
  0xe9   : > { %2511 = vsyncadd (%p3152_p12), [#allocation8], 4294967264 }
  0xea   : > { %2513 = dma.done.wait (%p3153_p0), [#allocation11], 32   ;;  %p3154_p13 = pmov %p3153_p0 }
  0xeb   : > { %p3155_p8 = pmov %p3153_p0 }
  0xec   : > { %2515 = vsyncadd (%p3154_p13), [#allocation11], 4294967264 }
  0xed   : > { %2517 = dma.done.wait (%p3155_p8), [#allocation14], 32   ;;  %p3156_p9 = pmov %p3153_p0 }
  0xee   : > { %p3157_p4 = pmov %p3153_p0 }
  0xef   : > { %2519 = vsyncadd (%p3156_p9), [#allocation14], 4294967264 }
  0xf0   : > { %2521 = dma.done.wait (%p3157_p4), [#allocation17], 32   ;;  %p3158_p1 = pmov %p3153_p0 }
  0xf1   : > { %p3159_p10 = pmov %p3153_p0 }
  0xf2   : > { %2523 = vsyncadd (%p3158_p1), [#allocation17], 4294967264 }
  0xf3   : > { %2525 = dma.done.wait (%p3159_p10), [#allocation20], 32   ;;  %p3160_p11 = pmov %p3153_p0 }
  0xf4   : > { %p3161_p3 = pmov %p3153_p0 }
  0xf5   : > { %2527 = vsyncadd (%p3160_p11), [#allocation20], 4294967264 }
  0xf6   : > { %2529 = dma.done.wait (%p3161_p3), [#allocation23], 272   ;;  %p3162_p2 = pmov %p3153_p0 }
  0xf7   : > { %vm780_vm0 = vcmask 261120   ;;  %v776_v0 = vld [vmem:[%s672_s14] sm:$0xf]  ;;  %s3163_s9 = sld [smem:[#allocation39_spill]]  ;;  %v2568_v9 = vmov 0.0   ;;  %vm2569_vm1 = vmmov 0   ;;  %v877_v33 = vlaneseq }
  0xf8   : > { %2531 = vsyncadd (%p3162_p2), [#allocation23], 4294967024  ;;  %v777_v1 = vunpack.c.l.bf16 %v776_v0  ;;  %1826 = vmatprep.subr.bf16.mxu0 %v2568_v9  ;;  %1830 = vmatprep.mubr.msk.bf16.mxu0 %vm2569_vm1, %v2568_v9  ;;  %v1759_v15 = vld [vmem:[#allocation7] ss:$0 sm:$0xff]  ;;  %v1760_v17 = vld [vmem:[#allocation9] ss:$0 sm:$0xff] }
  0xf9   : > { %1834 = vmatprep.subr.bf16.mxu1 %v2568_v9  ;;  %1836 = vmatprep.mubr.msk.bf16.mxu1 %vm2569_vm1, %v2568_v9  ;;  %v1761_v21 = vld [vmem:[#allocation10] ss:$0 sm:$0xff]  ;;  %s2570_s28 = smov 112   ;;  %s2571_s19 = smov 96   ;;  %vm884_vm2 = vcmask 130048   ;;  %v878_v34 = vand.u32 127, %v877_v33 }
  0xfa   : > { %v781_v2 = vsel %vm780_vm0, %v777_v1, 0.0  ;;  %s2572_s1 = smov 80   ;;  %s775_s26 = sld [smem:[#allocation3 + %s2706_s27]]  ;;  %vm934_vm4 = vcmask 64512   ;;  %vm952_vm5 = vcmask 1043456   ;;  %vm1325_vm6 = vcmask 523264  }
  0xfb   : > { %782 = vadd.xlane.f32.xlu0 %v781_v2  ;;  %s2573_s23 = smov 48   ;;  %s2574_s0 = smov 64  }
  0xfc   : > { %s2575_s7 = smov 16   ;;  %s3166_s14 = sld [smem:[#allocation50_spill]] }
  0xfd   : > { %v2080_v8 = vld [vmem:[%s3163_s9 + $0x8] sm:$0xff]   ;;  %v2081_v10 = vld [vmem:[%s3163_s9] sm:$0xff]   ;;  %s1536_s8 = scalar_lea.sflag [#allocation6], %s2898_s13  ;;  %p3167_p7 = scmp.ne.s32.totalorder %s3145_s3, 0 }
  0xfe   : > { %1827 = vmatpush3.bf16.msra.mxu0 %v2080_v8 }
  0xff   : > { %1828 = vmatprep.subr.bf16.mxu0 %v2568_v9 }
 0x100   : > { %v879_v35 = vstv %s775_s26  ;;  %s3164_s26 = sld [smem:[#allocation45_spill]] }
 0x101   : > { %vm880_vm3 = vcmp.lt.s32.totalorder %v878_v34, %v879_v35  ;;  %v2084_v34 = vld [vmem:[%s3093_s10 + $0x8] sm:$0xff]  }
 0x102   : > { %1829 = vmatpush3.bf16.msra.mxu0 %v2081_v10 }
 0x103   : > { %1840 = vmatprep.subr.bf16.mxu0 %v2568_v9 }
 0x184   : > { %v783_v3 = vpop.xlane.xlu0 %782 }
 0x185   : > { %v785_v4 = vmul.f32 0.03125, %v783_v3 }
 0x187   : > { %v786_v5 = vsub.f32 %v777_v1, %v785_v4 }
 0x189   : > { %v787_v6 = vmul.f32 %v786_v5, %v786_v5 }
 0x18b   : > { %v788_v7 = vsel %vm780_vm0, %v787_v6, 0.0  ;;  %v2082_v6 = vld [vmem:[%s3089_s6 + $0x8] sm:$0xff]  }
 0x18c   : > { %789 = vadd.xlane.f32.xlu0 %v788_v7  ;;  %v2083_v7 = vld [vmem:[%s3089_s6] sm:$0xff]  }
 0x215   : > { %v790_v11 = vpop.xlane.xlu0 %789 }
 0x216   : > { %v791_v12 = vmul.f32 0.03125, %v790_v11 }
 0x218   : > { %v792_v13 = vadd.f32 1e-12, %v791_v12 }
 0x21a   : > { %2094 = vrsqrt.f32 %v792_v13 }
 0x227   : > { %v2095_v14 = vpop.eup %2094 }
 0x228   : > { %v794_v16 = vmul.f32 %v2095_v14, %v786_v5 }
 0x22a   : > { %v801_v18 = vmul.f32 %v1759_v15, %v794_v16 }
 0x22c   : > { %v2946_v19 = vadd.f32 %v1760_v17, %v801_v18 }
 0x22e   : > { %v809_v20 = vpack.c.bf16 %v2946_v19, %v2946_v19 }
 0x230   : > { %1831 = vmatmul.mubr.msk.bf16.vlgmr.msra.gmra.mxu0 %vm780_vm0, %v809_v20 }
 0x231   : > { %1842 = vmatprep.mubr.msk.bf16.mxu0 %vm2569_vm1, %v2568_v9 }
 0x2f0   : > { %v870_v22 = vpop.f32.mrf.mxu0 }
 0x2f1   : > { %v871_v23 = vadd.f32 %v1761_v21, %v870_v22  ;;  %v1769_v21 = vld [vmem:[#allocation12] ss:$0 sm:$0xff] }
 0x2f2   : > { %v1832_v24 = vpop.f32.mrf.mxu0 }
 0x2f3   : > { %v876_v25 = vpack.c.bf16 %v871_v23, %v871_v23 }
 0x2f4   : > { %v873_v26 = vpop.f32.mrf.mxu0 }
 0x2f5   : > { %996 = vrot.lane.b32.xlu0 %v876_v25, %s2570_s28  ;;  %882 = vrot.lane.b32.xlu1 %v876_v25, %s2571_s19 }
 0x2f6   : > { %v1833_v27 = vpop.f32.mrf.mxu0 }
 0x2f9   : > { %998 = vrot.lane.b32.xlu1 %v876_v25, %s2572_s1  ;;  %s3165_s1 = sld [smem:[#allocation49_spill]] }
 0x367   : > { %v883_v28 = vpop.permute.xlu1 %882  ;;  %v997_v32 = vpop.permute.xlu0 %996 }
 0x368   : > { %v889_v29 = vsel %vm884_vm2, %v883_v28, 0 }
 0x369   : > { %1835 = vmatpush3.bf16.xpose.msra.mxu1 %v889_v29 }
 0x36a   : > { %1846 = vmatprep.subr.bf16.mxu1 %v2568_v9 }
 0x36b   : > { %v999_v30 = vpop.permute.xlu1 %998 }
 0x36c   : > { %v1004_v31 = vsel %vm884_vm2, %v999_v30, 0 }
 0x370   : > { %1837 = vmatmul.mubr.msk.bf16.vlgmr.msra.gmra.mxu1 %vm884_vm2, %v876_v25 }
 0x371   : > { %1847 = vmatpush3.bf16.xpose.msra.mxu1 %v1004_v31  ;;  %1848 = vmatprep.mubr.msk.bf16.mxu1 %vm2569_vm1, %v2568_v9 }
 0x372   : > { %1858 = vmatprep.subr.bf16.mxu1 %v2568_v9 }
 0x378   : > { %1849 = vmatmul.mubr.msk.bf16.vlgmr.msra.gmra.mxu1 %vm884_vm2, %v997_v32 }
 0x379   : > { %1862 = vmatprep.mubr.msk.bf16.mxu1 %vm2569_vm1, %v2568_v9  ;;  %1859 = vmatpush3.bf16.msra.mxu1 %v2082_v6 }
 0x37a   : > { %1860 = vmatprep.subr.bf16.mxu1 %v2568_v9 }
 0x37d   : > { %1861 = vmatpush3.bf16.msra.mxu1 %v2083_v7 }
 0x37e   : > { %1874 = vmatprep.subr.bf16.mxu1 %v2568_v9 }
 0x430   : > { %v925_v36 = vpop.f32.mrf.mxu1 }
 0x431   : > { %v933_v37 = vsel %vm880_vm3, %v925_v36, -1e+09 }
 0x432   : > { %v1838_v38 = vpop.f32.mrf.mxu1  ;;  %v935_v39 = vsel %vm934_vm4, %v933_v37, -inf }
 0x433   : > { %936 = vmax.xlane.f32.xlu1 %v935_v39  ;;  %v1773_v39 = vld [vmem:[#allocation13] ss:$0 sm:$0xff] }
 0x434   : > { %v928_v40 = vpop.f32.mrf.mxu1 }
 0x436   : > { %v1839_v41 = vpop.f32.mrf.mxu1 }
 0x437   : > { %v1774_v41 = vld [vmem:[#allocation15] ss:$0 sm:$0xff] }
 0x438   : > { %v1040_v42 = vpop.f32.mrf.mxu1 }
 0x439   : > { %v1046_v43 = vsel %vm880_vm3, %v1040_v42, -1e+09 }
 0x43a   : > { %v1850_v44 = vpop.f32.mrf.mxu1  ;;  %v1047_v45 = vsel %vm934_vm4, %v1046_v43, -inf }
 0x43b   : > { %1048 = vmax.xlane.f32.xlu0 %v1047_v45  ;;  %v2086_v45 = vld [vmem:[%s3164_s26 + $0x18] sm:$0xff]  }
 0x43c   : > { %v1043_v46 = vpop.f32.mrf.mxu1 }
 0x43d   : > { %v2087_v46 = vld [vmem:[%s3164_s26 + $0x10] sm:$0xff]  }
 0x43e   : > { %v1851_v47 = vpop.f32.mrf.mxu1 }
 0x43f   : > { %v2088_v47 = vld [vmem:[%s3164_s26 + $0x8] sm:$0xff]  }
 0x451   : > { %1059 = vrot.lane.b32.xlu0 %v876_v25, %s2573_s23  ;;  %s1795_s23 = sshll.u32 %s2706_s27, 4  ;;  %s2576_s27 = smov [#allocation25]  }
 0x452   : > { %s2464_s15 = sshll.u32 %s2576_s27, 4  ;;  %s2465_s15 = int_to_ptr.vmem [resolvable:$false] %s2464_s15 }
 0x453   : > { %s2466_s28 = scalar_lea.vmem %s2465_s15, 32 }
 0x4bc   : > { %v937_v48 = vpop.xlane.xlu1 %936 }
 0x4bd   : > { %v938_v49 = vsub.f32 %v933_v37, %v937_v48  ;;  %v2089_v48 = vld [vmem:[%s3164_s26] sm:$0xff]  }
 0x4bf   : > { %v939_v50 = vmul.f32 1.442695, %v938_v49  ;;  %v1775_v49 = vld [vmem:[#allocation16] ss:$0 sm:$0xff] }
 0x4c1   : > { %2096 = vpow2.f32 %v939_v50 }
 0x4c4   : > { %v1049_v51 = vpop.xlane.xlu0 %1048 }
 0x4c5   : > { %v1050_v52 = vsub.f32 %v1046_v43, %v1049_v51 }
 0x4c7   : > { %v1051_v53 = vmul.f32 1.442695, %v1050_v52 }
 0x4c8   : > { %v1060_v0 = vpop.permute.xlu0 %1059 }
 0x4c9   : > { %2098 = vpow2.f32 %v1051_v53  ;;  %v1065_v2 = vsel %vm952_vm5, %v1060_v0, 0 }
 0x4ce   : > { %v2097_v54 = vpop.eup %2096 }
 0x4cf   : > { %v941_v55 = vsel %vm934_vm4, %v2097_v54, 0.0 }
 0x4d0   : > { %942 = vadd.xlane.f32.xlu1 %v941_v55 }
 0x4d6   : > { %v2099_v56 = vpop.eup %2098 }
 0x4d7   : > { %v1053_v57 = vsel %vm934_vm4, %v2099_v56, 0.0 }
 0x4d8   : > { %1054 = vadd.xlane.f32.xlu1 %v1053_v57 }
 0x4e9   : > { %947 = vrot.lane.b32.xlu1 %v876_v25, %s2574_s0  ;;  %s773_s0 = scalar_lea.vmem [#allocation25], %s2898_s13 }
 0x4ea   : > { %s1548_s4 = sshll.u32 %s773_s0, 4  ;;  %s3042_s4 = int_to_ptr.vmem [resolvable:$true] %s1548_s4 }
 0x4eb   : > { %s2460_s11 = scalar_lea.vmem %s3042_s4, 16  ;;  %p2467_p0 = scmp.lt.s32.totalorder %s3042_s4, %s2465_s15 }
 0x4ec   : > { %p2461_p5 = scmp.ne.s32.totalorder %s3042_s4, %s2460_s11  ;;  %p2468_p13 = scmp.lt.s32.totalorder %s2466_s28, %s2460_s11 }
 0x4ee   : > { %p2462_p6 = pnand %p2461_p5, %p3167_p7  ;;  %p2469_p8 = por %p2468_p13, %p2467_p0 }
 0x4f0   : > { %p2463_p12 = pneg %p2462_p6 }
 0x4f2   : > { %p2470_p9 = pnand %p2469_p8, %p2463_p12 }
 0x559   : > { %v943_v58 = vpop.xlane.xlu1 %942 }
 0x55a   : > { %2100 = vrcp.f32 %v943_v58 }
 0x561   : > { %v1055_v59 = vpop.xlane.xlu1 %1054 }
 0x562   : > { %2102 = vrcp.f32 %v1055_v59 }
 0x565   : > { %v948_v60 = vpop.permute.xlu1 %947 }
 0x566   : > { %v954_v61 = vsel %vm952_vm5, %v948_v60, 0 }
 0x567   : > { %v2101_v62 = vpop.eup %2100  ;;  %1841 = vmatpush3.bf16.msra.mxu0 %v954_v61 }
 0x568   : > { %1852 = vmatprep.subr.bf16.mxu0 %v2568_v9  ;;  %v945_v63 = vmul.f32 %v2101_v62, %v2097_v54 }
 0x56a   : > { %v946_v1 = vpack.c.bf16 %v945_v63, %v945_v63 }
 0x56c   : > { %1843 = vmatmul.mubr.msk.bf16.vlgmr.msra.gmra.mxu0 %vm934_vm4, %v946_v1  ;;  %v1779_v1 = vld [vmem:[#allocation18] ss:$0 sm:$0xff] }
 0x56d   : > { %1853 = vmatpush3.bf16.msra.mxu0 %v1065_v2  ;;  %1854 = vmatprep.mubr.msk.bf16.mxu0 %vm2569_vm1, %v2568_v9 }
 0x56e   : > { %1866 = vmatprep.subr.bf16.mxu0 %v2568_v9 }
 0x56f   : > { %v2103_v3 = vpop.eup %2102 }
 0x570   : > { %v1057_v4 = vmul.f32 %v2103_v3, %v2099_v56 }
 0x572   : > { %v1058_v5 = vpack.c.bf16 %v1057_v4, %v1057_v4 }
 0x574   : > { %1855 = vmatmul.mubr.msk.bf16.vlgmr.msra.gmra.mxu0 %vm934_vm4, %v1058_v5 }
 0x575   : > { %1870 = vmatprep.mubr.msk.bf16.mxu0 %vm2569_vm1, %v2568_v9  ;;  %1867 = vmatpush3.bf16.msra.mxu0 %v2084_v34 }
 0x576   : > { %1868 = vmatprep.subr.bf16.mxu0 %v2568_v9 }
 0x62c   : > { %v990_v8 = vpop.f32.mrf.mxu0 }
 0x62e   : > { %v1844_v10 = vpop.f32.mrf.mxu0 }
 0x630   : > { %v993_v11 = vpop.f32.mrf.mxu0 }
 0x632   : > { %v1845_v12 = vpop.f32.mrf.mxu0 }
 0x634   : > { %v1101_v13 = vpop.f32.mrf.mxu0 }
 0x635   : > { %1108 = vrot.lane.b32.xlu1 %v1101_v13, %s2575_s7  ;;  %s3040_s7 = scalar_lea.hbm %s3166_s14, %s1795_s23 }
 0x636   : > { %v1856_v14 = vpop.f32.mrf.mxu0 }
 0x638   : > { %v1104_v15 = vpop.f32.mrf.mxu0 }
 0x639   : > { %v2090_v15 = vld [vmem:[#allocation22 + $0x8] sm:$0xff]  }
 0x63a   : > { %v1857_v16 = vpop.f32.mrf.mxu0 }
 0x63b   : > { %v2091_v16 = vld [vmem:[#allocation22] sm:$0xff]  }
 0x6a7   : > { %v1109_v17 = vpop.permute.xlu1 %1108 }
 0x6a8   : > { %v1111_v18 = vsel %vm884_vm2, %v990_v8, %v1109_v17 }
 0x6a9   : > { %v1112_v20 = vpack.c.bf16 %v1111_v18, %v1111_v18 }
 0x6ab   : > { %1863 = vmatmul.mubr.msk.bf16.vlgmr.msra.gmra.mxu1 %vm780_vm0, %v1112_v20 }
 0x6ac   : > { %1882 = vmatprep.mubr.msk.bf16.mxu1 %vm2569_vm1, %v2568_v9  ;;  %1875 = vmatpush3.bf16.msra.mxu1 %v2086_v45 }
 0x6ad   : > { %1876 = vmatprep.subr.bf16.mxu1 %v2568_v9 }
 0x6b0   : > { %1877 = vmatpush3.bf16.msra.mxu1 %v2087_v46 }
 0x6b1   : > { %1878 = vmatprep.subr.bf16.mxu1 %v2568_v9 }
 0x6b4   : > { %1879 = vmatpush3.bf16.msra.mxu1 %v2088_v47 }
 0x6b5   : > { %1880 = vmatprep.subr.bf16.mxu1 %v2568_v9 }
 0x6b8   : > { %1881 = vmatpush3.bf16.msra.mxu1 %v2089_v48 }
 0x76b   : > { %v1173_v22 = vpop.f32.mrf.mxu1 }
 0x76c   : > { %v1174_v23 = vadd.f32 %v1769_v21, %v1173_v22  ;;  %v1785_v22 = vld [vmem:[#allocation19] ss:$0 sm:$0xff] }
 0x76d   : > { %v1864_v24 = vpop.f32.mrf.mxu1 }
 0x76e   : > { %v1179_v25 = vadd.f32 %v1174_v23, %v2946_v19  ;;  %v2085_v19 = vld [vmem:[%s3093_s10] sm:$0xff]   ;;  %v1786_v24 = vld [vmem:[#allocation21] ss:$0 sm:$0xff] }
 0x76f   : > { %v1176_v26 = vpop.f32.mrf.mxu1  ;;  %1869 = vmatpush3.bf16.msra.mxu0 %v2085_v19 }
 0x770   : > { %v1182_v27 = vsel %vm780_vm0, %v1179_v25, 0.0  ;;  %1886 = vmatprep.subr.bf16.mxu0 %v2568_v9 }
 0x771   : > { %1183 = vadd.xlane.f32.xlu1 %v1182_v27  ;;  %v1865_v28 = vpop.f32.mrf.mxu1 }
 0x772   : > { %v2092_v28 = vld [vmem:[%s3101_s18 + $0x8] sm:$0xff]  }
 0x7fa   : > { %v1184_v29 = vpop.xlane.xlu1 %1183 }
 0x7fb   : > { %v1185_v30 = vmul.f32 0.03125, %v1184_v29  ;;  %v2093_v29 = vld [vmem:[%s3101_s18] sm:$0xff]  }
 0x7fd   : > { %v1186_v31 = vsub.f32 %v1179_v25, %v1185_v30  ;;  %v1787_v30 = vld [vmem:[#allocation24] ss:$0 sm:$0xff] }
 0x7ff   : > { %v1187_v32 = vmul.f32 %v1186_v31, %v1186_v31 }
 0x801   : > { %v1188_v33 = vsel %vm780_vm0, %v1187_v32, 0.0 }
 0x802   : > { %1189 = vadd.xlane.f32.xlu0 %v1188_v33 }
 0x88b   : > { %v1190_v35 = vpop.xlane.xlu0 %1189 }
 0x88c   : > { %v1191_v36 = vmul.f32 0.03125, %v1190_v35 }
 0x88e   : > { %v1192_v37 = vadd.f32 1e-12, %v1191_v36 }
 0x890   : > { %2104 = vrsqrt.f32 %v1192_v37 }
 0x89d   : > { %v2105_v38 = vpop.eup %2104 }
 0x89e   : > { %v1194_v40 = vmul.f32 %v2105_v38, %v1186_v31 }
 0x8a0   : > { %v1201_v42 = vmul.f32 %v1773_v39, %v1194_v40 }
 0x8a2   : > { %v1208_v43 = vadd.f32 %v1774_v41, %v1201_v42 }
 0x8a4   : > { %v1209_v44 = vpack.c.bf16 %v1208_v43, %v1208_v43 }
 0x8a6   : > { %1871 = vmatmul.mubr.msk.bf16.vlgmr.msra.gmra.mxu0 %vm780_vm0, %v1209_v44 }
 0x8a7   : > { %1890 = vmatprep.mubr.msk.bf16.mxu0 %vm2569_vm1, %v2568_v9  ;;  %1887 = vmatpush3.bf16.msra.mxu0 %v2090_v15 }
 0x8a8   : > { %1888 = vmatprep.subr.bf16.mxu0 %v2568_v9 }
 0x8ab   : > { %1889 = vmatpush3.bf16.msra.mxu0 %v2091_v16 }
 0x8ac   : > { %1894 = vmatprep.subr.bf16.mxu0 %v2568_v9 }
 0x966   : > { %v1270_v50 = vpop.f32.mrf.mxu0 }
 0x967   : > { %v1271_v51 = vadd.f32 %v1775_v49, %v1270_v50 }
 0x968   : > { %v1872_v52 = vpop.f32.mrf.mxu0 }
 0x969   : > { %v1277_v53 = vmul.f32 0.044715, %v1271_v51  ;;  %v1276_v61 = vmul.f32 0.5, %v1271_v51 }
 0x96a   : > { %v1273_v54 = vpop.f32.mrf.mxu0 }
 0x96b   : > { %v1278_v55 = vmul.f32 %v1277_v53, %v1271_v51 }
 0x96c   : > { %v1873_v56 = vpop.f32.mrf.mxu0 }
 0x96d   : > { %v1279_v57 = vmul.f32 %v1278_v55, %v1271_v51 }
 0x96f   : > { %v1280_v58 = vadd.f32 %v1279_v57, %v1271_v51 }
 0x971   : > { %v1281_v59 = vmul.f32 0.7978846, %v1280_v58 }
 0x973   : > { %2106 = vtanh.f32 %v1281_v59 }
 0x980   : > { %v2107_v60 = vpop.eup %2106 }
 0x981   : > { %v1283_v62 = vadd.f32 1.0, %v2107_v60 }
 0x983   : > { %v1284_v63 = vmul.f32 %v1283_v62, %v1276_v61 }
 0x985   : > { %v1285_v0 = vpack.c.bf16 %v1284_v63, %v1284_v63 }
 0x987   : > { %1883 = vmatmul.mubr.msk.bf16.vlgmr.msra.gmra.mxu1 %vm1325_vm6, %v1285_v0 }
 0xa47   : > { %v1363_v2 = vpop.f32.mrf.mxu1 }
 0xa48   : > { %v1364_v3 = vadd.f32 %v1779_v1, %v1363_v2 }
 0xa49   : > { %v1884_v4 = vpop.f32.mrf.mxu1 }
 0xa4a   : > { %v1369_v5 = vadd.f32 %v1364_v3, %v1208_v43 }
 0xa4b   : > { %v1366_v6 = vpop.f32.mrf.mxu1 }
 0xa4c   : > { %v1372_v7 = vsel %vm780_vm0, %v1369_v5, 0.0 }
 0xa4d   : > { %1373 = vadd.xlane.f32.xlu1 %v1372_v7  ;;  %v1885_v8 = vpop.f32.mrf.mxu1 }
 0xad6   : > { %v1374_v10 = vpop.xlane.xlu1 %1373 }
 0xad7   : > { %v1375_v11 = vmul.f32 0.03125, %v1374_v10 }
 0xad9   : > { %v1376_v12 = vsub.f32 %v1369_v5, %v1375_v11 }
 0xadb   : > { %v1377_v13 = vmul.f32 %v1376_v12, %v1376_v12 }
 0xadd   : > { %v1378_v14 = vsel %vm780_vm0, %v1377_v13, 0.0 }
 0xade   : > { %1379 = vadd.xlane.f32.xlu1 %v1378_v14 }
 0xb67   : > { %v1380_v17 = vpop.xlane.xlu1 %1379 }
 0xb68   : > { %v1381_v18 = vmul.f32 0.03125, %v1380_v17 }
 0xb6a   : > { %v1382_v20 = vadd.f32 1e-12, %v1381_v18 }
 0xb6c   : > { %2108 = vrsqrt.f32 %v1382_v20 }
 0xb79   : > { %v2109_v21 = vpop.eup %2108 }
 0xb7a   : > { %v1384_v23 = vmul.f32 %v2109_v21, %v1376_v12 }
 0xb7c   : > { %v1391_v25 = vmul.f32 %v1785_v22, %v1384_v23 }
 0xb7e   : > { %v1398_v26 = vadd.f32 %v1786_v24, %v1391_v25 }
 0xb80   : > { %v1399_v27 = vpack.c.bf16 %v1398_v26, %v1398_v26 }
 0xb82   : > { %1891 = vmatmul.mubr.msk.bf16.vlgmr.msra.gmra.mxu0 %vm780_vm0, %v1399_v27 }
 0xb83   : > { %1898 = vmatprep.mubr.msk.bf16.mxu0 %vm2569_vm1, %v2568_v9  ;;  %1895 = vmatpush3.bf16.msra.mxu0 %v2092_v28 }
 0xb84   : > { %1896 = vmatprep.subr.bf16.mxu0 %v2568_v9  ;;  %v1791_v9 = vld [vmem:[%s3165_s1] ss:$0 sm:$0xff] }
 0xb87   : > { %1897 = vmatpush3.bf16.msra.mxu0 %v2093_v29 }
 0xc42   : > { %v1460_v31 = vpop.f32.mrf.mxu0 }
 0xc43   : > { %v1461_v32 = vadd.f32 %v1787_v30, %v1460_v31 }
 0xc44   : > { %v1892_v33 = vpop.f32.mrf.mxu0 }
 0xc45   : > { %2110 = vtanh.f32 %v1461_v32 }
 0xc46   : > { %v1463_v34 = vpop.f32.mrf.mxu0 }
 0xc48   : > { %v1893_v19 = vpop.f32.mrf.mxu0 }
 0xc52   : > { %v2111_v35 = vpop.eup %2110 }
 0xc53   : > { %v1467_v36 = vpack.c.bf16 %v2111_v35, %v2111_v35 }
 0xc55   : > { %1899 = vmatmul.mubr.msk.bf16.vlgmr.msra.gmra.mxu0 %vm780_vm0, %v1467_v36 }
 0xd15   : > { %v1528_v37 = vpop.f32.mrf.mxu0 }
 0xd16   : > { %v1529_v38 = vadd.f32 %v1791_v9, %v1528_v37 }
 0xd17   : > { %v1900_v39 = vpop.f32.mrf.mxu0 }
 0xd18   : > { %1534 = vst [vmem:[%s773_s0] sm:$0x1] %v1529_v38 }
 0xd19   : > { %v1531_v40 = vpop.f32.mrf.mxu0 }
 0xd1a   : > { %2473 = shalt.err (!%p2470_p9)
}
 0xd1b   : > { %s2474_s19 = scalar_lea.hbm %s3040_s7, 16  ;;  %s2478_s23 = scalar_lea.hbm %s3166_s14, 32 }
 0xd1c   : > { %p2475_p4 = scmp.ne.s32.totalorder %s3040_s7, %s2474_s19  ;;  %p2479_p11 = scmp.lt.s32.totalorder %s3040_s7, %s3166_s14 }
 0xd1d   : > { %p2480_p3 = scmp.lt.s32.totalorder %s2478_s23, %s2474_s19 }
 0xd1e   : > { %p2476_p1 = pnand %p2475_p4, %p3167_p7 }
 0xd1f   : > { %p2481_p2 = por %p2480_p3, %p2479_p11 }
 0xd20   : > { %p2477_p10 = pneg %p2476_p1 }
 0xd22   : > { %p2482_p5 = pnand %p2481_p2, %p2477_p10 }
 0xd24   : > { %2485 = shalt.err (!%p2482_p5)
}
 0xd25   : > { %1952 = dma.vmem_to_hbm [thread:$0]  (%p3167_p7), %s3042_s4, 16, %s3040_s7, %s1536_s8   ;;  %v1901_v41 = vpop.f32.mrf.mxu0 }
 0xd26 PF: > { %s1560_s30 = sand.u32 1, %s2538_s24   ;;  %p3168_p6 = scmp.ne.s32.totalorder %s3146_s5, 0 }
 0xd27   : > { %p3169_p12 = scmp.ge.s32.totalorder %s2550_s12, 2  ;;  %s1561_s11 = scalar_lea.sflag [#allocation6], %s1560_s30 }
 0xd29   : > { %p1996_p0 = pnand %p3169_p12, %p3168_p6 }
 0xd2b   : > { %p1997_p13 = pneg %p1996_p0 }
 0xd2d   : > { %2533 = dma.done.wait (%p1997_p13), %s1561_s11, 16  }
 0xd2e   : > { %2535 = vsyncadd (%p1997_p13), %s1561_s11, 4294967280  ;;  %p43_p8 = scmp.ge.s32.totalorder %s2835_s21, 4   ;;  %s3170_s24 = smov %s2542_s2 }
 0xd2f   : > { %s3171_s2 = smov %s2546_s25  ;;  %s3172_s25 = smov %s2846_s22 }
 0xd30   : > { %s3173_s12 = smov %s2835_s21  ;;  %45 = sbr.rel (!%p43_p8) target bundleno = 38 (0x26), region = 189 }
 0xd35   :  { %1565 = vsyncpa [#allocation5], 1 }
 0xd36   :  { %1567 = vsyncpa [#allocation5 + $0x1], 1 }
 0xd37   :  { %1568 = vsyncpa [#allocation8], 1 }
 0xd38   :  { %1569 = vsyncpa [#allocation11], 1 }
 0xd39   :  { %1570 = vsyncpa [#allocation14], 1 }
 0xd3a   :  { %1571 = vsyncpa [#allocation17], 1 }
 0xd3b   :  { %1572 = vsyncpa [#allocation20], 1 }
 0xd3c   :  { %1573 = vsyncpa [#allocation23], 1 }
 0xd3d   :  { %1574 = vsyncpa [#allocation6], 1 }
 0xd3e   :  { %1576 = vsyncpa [#allocation6 + $0x1], 1 }

</bundles_post_ra>
